<compile_context>
chip_gen: v6e
topology: v6e:2x2x1
jax: 0.10.0
libtpu: 0.0.40
codegen_flags: <defaults>
</compile_context>

<pallas_src>
import math
import jax
import jax.numpy as jnp
from jax.experimental import pallas as pl
from jax.experimental.pallas import tpu as pltpu

NULL_ID = 0            # data.NULL_ID (padding token id)
NEG_INF = -1e18        # OpenNMT masked_fill value
LN_EPS = 1e-6
MATMUL_DTYPE = jnp.bfloat16   # MXU input dtype (accumulation stays f32)

# packed per-layer vector rows: [ln1_g, ln1_b, bq, bk, bv, bo, ln2_g, ln2_b, b2]
_VROWS = 9


# ----------------------------------------------------------------------------
# in-kernel helpers
# ----------------------------------------------------------------------------
def _layernorm(x2d, g, b):
    """OpenNMT LayerNorm: a_2 * (x - mean) / (std + eps) + b_2, unbiased std."""
    d = x2d.shape[-1]
    mean = jnp.mean(x2d, axis=-1, keepdims=True)
    c = x2d - mean
    var = jnp.sum(c * c, axis=-1, keepdims=True) * (1.0 / (d - 1))
    inv = pl.reciprocal(jnp.sqrt(var) + LN_EPS)      # exact reciprocal
    return g * (c * inv) + b


def make_encoder_kernel(num_heads, num_layers, batch_tile, seq_len):
    """Full encoder stack for one batch tile; grid = (B//TB, L)."""
    H, TB, S = num_heads, batch_tile, seq_len

    def kernel(words_ref, x_ref, vec_ref,
               wq_ref, wk_ref, wv_ref, wo_ref, w1_ref, b1_ref, w2_ref,
               fln_ref, o_ref, acc_ref, neg_ref):
        l = pl.program_id(1)

        # first layer of this batch tile: load residual stream into VMEM and
        # build the key-pad additive bias ONCE (reused by all L layers)
        @pl.when(l == 0)
        def _():
            xs = x_ref[...]                                    # (TB, S, D)
            acc_ref[...] = xs.reshape(TB * S, xs.shape[-1])
            neg_ref[...] = jnp.where(words_ref[...] == NULL_ID,
                                     NEG_INF, 0.0).astype(jnp.float32)

        x = acc_ref[...]                    # (TB*S, D) f32, resident across layers
        D = x.shape[-1]
        dh = D // H

        vec = vec_ref[0]                    # (9, D) packed per-layer vectors
        ln1g, ln1b = vec[0:1], vec[1:2]
        bq, bk, bv, bo = vec[2:3], vec[3:4], vec[4:5], vec[5:6]
        ln2g, ln2b, b2 = vec[6:7], vec[7:8], vec[8:9]
        neg = neg_ref[...]                  # (TB, 1, S) key-pad bias
        wo3 = wo_ref[0]                     # (H, dh, D) bf16

        # ---- self-attention sub-layer (pre-norm) ----
        xn = _layernorm(x, ln1g, ln1b)
        xnc = xn.astype(MATMUL_DTYPE)
        # 1/sqrt(dh) is pre-folded into wq / bq at parameter-prep time;
        # projections run on the full (TB*S, D) slab for MXU M-fill.
        q = jnp.dot(xnc, wq_ref[0], preferred_element_type=jnp.float32) + bq
        k = jnp.dot(xnc, wk_ref[0], preferred_element_type=jnp.float32) + bk
        v = jnp.dot(xnc, wv_ref[0], preferred_element_type=jnp.float32) + bv

        attn_rows = []
        for b in range(TB):                 # TB is small; static unroll
            rs = slice(b * S, (b + 1) * S)
            q3 = jnp.transpose(q[rs].reshape(S, H, dh), (1, 0, 2)).astype(MATMUL_DTYPE)
            k3 = jnp.transpose(k[rs].reshape(S, H, dh), (1, 0, 2)).astype(MATMUL_DTYPE)
            v3 = jnp.transpose(v[rs].reshape(S, H, dh), (1, 0, 2)).astype(MATMUL_DTYPE)
            s = jnp.einsum("hqd,hkd->hqk", q3, k3,
                           preferred_element_type=jnp.float32)       # (H, S, S)
            s = s + neg[b]                                           # key-pad bias
            s = s - jnp.max(s, axis=-1, keepdims=True)
            p = jnp.exp(s)
            p = p * pl.reciprocal(jnp.sum(p, axis=-1, keepdims=True), approx=True)
            ctx = jnp.einsum("hqk,hkd->hqd", p.astype(MATMUL_DTYPE), v3,
                             preferred_element_type=jnp.float32)     # (H, S, dh)
            # Output projection with wo pre-reshaped to (H, dh, D): per-head 2-D
            # dots accumulated over heads — no transpose-back / lane-merge reshape
            # and no (H, S, D) f32 intermediate.
            acc_b = jnp.dot(ctx[0].astype(MATMUL_DTYPE), wo3[0],
                            preferred_element_type=jnp.float32)      # (S, D)
            for h in range(1, H):
                acc_b = acc_b + jnp.dot(ctx[h].astype(MATMUL_DTYPE), wo3[h],
                                        preferred_element_type=jnp.float32)
            attn_rows.append(acc_b)
        attn = attn_rows[0] if TB == 1 else jnp.concatenate(attn_rows, axis=0)
        # nn.Dropout is identity in eval mode
        res = (attn + bo) + x

        # ---- position-wise feed-forward sub-layer (pre-norm, residual) ----
        rn = _layernorm(res, ln2g, ln2b)
        inter = jnp.maximum(
            jnp.dot(rn.astype(MATMUL_DTYPE), w1_ref[0],
                    preferred_element_type=jnp.float32) + b1_ref[0], 0.0)
        ffn = jnp.dot(inter.astype(MATMUL_DTYPE), w2_ref[0],
                      preferred_element_type=jnp.float32) + b2
        y = ffn + res

        acc_ref[...] = y                    # keep residual stream in VMEM

        # last layer: final stack LayerNorm, single HBM write-back
        @pl.when(l == num_layers - 1)
        def _():
            fln = fln_ref[...]
            o_ref[...] = _layernorm(y, fln[0:1], fln[1:2]).reshape(TB, S, D)

    return kernel


# ----------------------------------------------------------------------------
# parameter prep: stack per-layer params, fold q-scale, pack small vectors,
# reshape wo -> (H, dh, D), cast weight matrices to bf16
# ----------------------------------------------------------------------------
def prep_params(layer_params, final_ln, num_heads):
    dim = layer_params[0]["wq"].shape[0]
    assert dim % num_heads == 0
    dh = dim // num_heads
    scale = 1.0 / math.sqrt(dh)

    vecs, wq, wk, wv, wo3, w1, b1, w2 = [], [], [], [], [], [], [], []
    for p in layer_params:
        vecs.append(jnp.concatenate(
            [p["ln1_g"], p["ln1_b"], p["bq"] * scale, p["bk"], p["bv"], p["bo"],
             p["ln2_g"], p["ln2_b"], p["b2"]], axis=0).astype(jnp.float32))
        wq.append((p["wq"] * scale).astype(MATMUL_DTYPE))   # fold 1/sqrt(dh)
        wk.append(p["wk"].astype(MATMUL_DTYPE))
        wv.append(p["wv"].astype(MATMUL_DTYPE))
        wo3.append(p["wo"].reshape(num_heads, dh, dim).astype(MATMUL_DTYPE))
        w1.append(p["w1"].astype(MATMUL_DTYPE))
        b1.append(p["b1"].astype(jnp.float32))
        w2.append(p["w2"].astype(MATMUL_DTYPE))

    sp = dict(
        vecs=jnp.stack(vecs, 0),           # (L, 9, D)      f32
        wq=jnp.stack(wq, 0),               # (L, D, D)      bf16
        wk=jnp.stack(wk, 0),
        wv=jnp.stack(wv, 0),
        wo3=jnp.stack(wo3, 0),             # (L, H, dh, D)  bf16
        w1=jnp.stack(w1, 0),               # (L, D, Hff)    bf16
        b1=jnp.stack(b1, 0),               # (L, 1, Hff)    f32
        w2=jnp.stack(w2, 0),               # (L, Hff, D)    bf16
    )
    flnv = jnp.concatenate([final_ln["g"], final_ln["b"]],
                           axis=0).astype(jnp.float32)       # (2, D)
    return sp, flnv


# ----------------------------------------------------------------------------
# tile / VMEM-budget selection
# ----------------------------------------------------------------------------
def _pick_batch_tile(batch, seq, max_rows=512):
    """Largest TB dividing B with >=2 parallel grid steps (v7x: 2 TCs) and a
    bounded number of rows per block."""
    best = 1
    for tb in range(1, batch + 1):
        if batch % tb:
            continue
        if batch >= 2 and batch // tb < 2:
            continue
        if tb * seq > max_rows:
            continue
        best = tb
    return best


def _pick_vmem_limit():
    """Generation-aware VMEM budget: ~7/8 of physical, capped at 112 MiB
    (v5e/v6e have 128 MiB, v7x only 64 MiB per TensorCore)."""
    try:
        cap = int(pltpu.get_tpu_info().vmem_capacity_bytes)
        return int(min(cap - cap // 8, 112 * 1024 * 1024))
    except Exception:
        return 48 * 1024 * 1024            # conservative: fits v7x's 64 MiB


# ----------------------------------------------------------------------------
# single fused pallas_call for the whole encoder stack + final LayerNorm
# ----------------------------------------------------------------------------
def encoder_stack(words, x, sp, flnv, num_heads, batch_tile=None):
    """words: (B,1,S) int32 token ids; x: (B,S,D) f32 -> (B,S,D) f32."""
    B, S, D = x.shape
    L, _, Hff = sp["w1"].shape
    dh = D // num_heads
    TB = batch_tile or _pick_batch_tile(B, S)
    assert B % TB == 0
    nb = B // TB

    bmap = lambda i, l: (i, 0, 0)       # per-batch-tile blocks, resident across l
    wmap3 = lambda i, l: (l, 0, 0)      # per-layer stacked weights (pipelined in l)
    wmap4 = lambda i, l: (l, 0, 0, 0)
    cmap = lambda i, l: (0, 0)          # grid-invariant final-LN params

    in_specs = [
        pl.BlockSpec((TB, 1, S), bmap),                    # words
        pl.BlockSpec((TB, S, D), bmap),                    # x
        pl.BlockSpec((1, _VROWS, D), wmap3),               # packed LN/bias vectors
        pl.BlockSpec((1, D, D), wmap3),                    # wq (scale folded)
        pl.BlockSpec((1, D, D), wmap3),                    # wk
        pl.BlockSpec((1, D, D), wmap3),                    # wv
        pl.BlockSpec((1, num_heads, dh, D), wmap4),        # wo reshaped (H,dh,D)
        pl.BlockSpec((1, D, Hff), wmap3),                  # w1
        pl.BlockSpec((1, 1, Hff), wmap3),                  # b1
        pl.BlockSpec((1, Hff, D), wmap3),                  # w2
        pl.BlockSpec((2, D), cmap),                        # final LN (g; b)
    ]

    # advisory cost model for XLA scheduling around the custom call
    flops = B * L * (8 * S * D * D + 4 * S * D * Hff + 4 * S * S * D)
    transc = B * L * num_heads * S * S
    param_bytes = sum(int(a.size) * a.dtype.itemsize for a in sp.values())
    bytes_accessed = nb * param_bytes + 2 * B * S * D * 4 + B * S * 4

    return pl.pallas_call(
        make_encoder_kernel(num_heads, L, TB, S),
        out_shape=jax.ShapeDtypeStruct((B, S, D), jnp.float32),
        grid=(nb, L),
        in_specs=in_specs,
        out_specs=pl.BlockSpec((TB, S, D), bmap),
        scratch_shapes=[pltpu.VMEM((TB * S, D), jnp.float32),   # residual stream
                        pltpu.VMEM((TB, 1, S), jnp.float32)],   # key-pad bias
        compiler_params=pltpu.CompilerParams(
            dimension_semantics=("parallel", "arbitrary"),
            vmem_limit_bytes=_pick_vmem_limit()),
        cost_estimate=pl.CostEstimate(flops=int(flops),
                                      transcendentals=int(transc),
                                      bytes_accessed=int(bytes_accessed)),
    )(words, x, sp["vecs"], sp["wq"], sp["wk"], sp["wv"], sp["wo3"],
      sp["w1"], sp["b1"], sp["w2"], flnv)


# ----------------------------------------------------------------------------
# parameter init (deterministic, synthetic)
# ----------------------------------------------------------------------------
def init_params(key, vocab, dim, num_layers, hidden_size):
    keys = jax.random.split(key, 1 + num_layers)
    emb_table = jax.random.normal(keys[0], (vocab, dim), jnp.float32) * 0.1

    def lin(k, din, dout):
        # stored as (d_in, d_out) so the kernel computes x @ W + b
        return jax.random.normal(k, (din, dout), jnp.float32) * 0.05

    layers = []
    for l in range(num_layers):
        ks = jax.random.split(keys[1 + l], 6)
        layers.append(dict(
            ln1_g=jnp.ones((1, dim), jnp.float32), ln1_b=jnp.zeros((1, dim), jnp.float32),
            wq=lin(ks[0], dim, dim), bq=jnp.zeros((1, dim), jnp.float32),
            wk=lin(ks[1], dim, dim), bk=jnp.zeros((1, dim), jnp.float32),
            wv=lin(ks[2], dim, dim), bv=jnp.zeros((1, dim), jnp.float32),
            wo=lin(ks[3], dim, dim), bo=jnp.zeros((1, dim), jnp.float32),
            ln2_g=jnp.ones((1, dim), jnp.float32), ln2_b=jnp.zeros((1, dim), jnp.float32),
            w1=lin(ks[4], dim, hidden_size), b1=jnp.zeros((1, hidden_size), jnp.float32),
            w2=lin(ks[5], hidden_size, dim), b2=jnp.zeros((1, dim), jnp.float32),
        ))
    final_ln = dict(g=jnp.ones((1, dim), jnp.float32), b=jnp.zeros((1, dim), jnp.float32))
    return emb_table, layers, final_ln


# ----------------------------------------------------------------------------
# full encoder forward (embedding gather / transposes in XLA, stack in Pallas)
# ----------------------------------------------------------------------------
def transformer_encoder(input_ids, lengths, emb_table, layer_params, final_ln,
                        num_heads):
    # input_ids: (S, B) int32, seq-major (PyTorch convention)
    del lengths  # unused by the PyTorch forward as well
    # TODO(synk): embedding gather + (S,B)<->(B,S) transposes stay in XLA.
    emb = jnp.take(emb_table, input_ids, axis=0)           # (S, B, D)
    x = jnp.transpose(emb, (1, 0, 2))                      # (B, S, D)
    words = jnp.transpose(input_ids)[:, None, :]           # (B, 1, S) token ids

    sp, flnv = prep_params(layer_params, final_ln, num_heads)
    out = encoder_stack(words, x, sp, flnv, num_heads)
    return emb, jnp.transpose(out, (1, 0, 2))              # (S,B,D), (S,B,D)


# ----------------------------------------------------------------------------
# pure-JAX f32 reference (matches PyTorch module semantics, eval mode)
# ----------------------------------------------------------------------------
def reference_encoder(input_ids, emb_table, layer_params, final_ln, num_heads):
    emb = jnp.take(emb_table, input_ids, axis=0)           # (S, B, D)
    x = jnp.transpose(emb, (1, 0, 2))                      # (B, S, D)
    words = jnp.transpose(input_ids)                       # (B, S)
    B, S, D = x.shape
    H = num_heads
    dh = D // H
    key_pad = (words == NULL_ID)[:, None, None, :]         # (B,1,1,S)

    def ln(v, g, b):
        m = jnp.mean(v, axis=-1, keepdims=True)
        c = v - m
        var = jnp.sum(c * c, axis=-1, keepdims=True) / (D - 1)
        return g * c / (jnp.sqrt(var) + LN_EPS) + b

    for p in layer_params:
        xn = ln(x, p["ln1_g"], p["ln1_b"])
        q = (xn @ p["wq"] + p["bq"]).reshape(B, S, H, dh).transpose(0, 2, 1, 3)
        k = (xn @ p["wk"] + p["bk"]).reshape(B, S, H, dh).transpose(0, 2, 1, 3)
        v = (xn @ p["wv"] + p["bv"]).reshape(B, S, H, dh).transpose(0, 2, 1, 3)
        s = (q / math.sqrt(dh)) @ jnp.swapaxes(k, -1, -2)  # (B,H,S,S)
        s = jnp.where(key_pad, NEG_INF, s)
        a = jax.nn.softmax(s, axis=-1)
        ctx = (a @ v).transpose(0, 2, 1, 3).reshape(B, S, D)
        res = (ctx @ p["wo"] + p["bo"]) + x
        rn = ln(res, p["ln2_g"], p["ln2_b"])
        x = res + (jnp.maximum(rn @ p["w1"] + p["b1"], 0.0) @ p["w2"] + p["b2"])
    x = ln(x, final_ln["g"], final_ln["b"])
    return jnp.transpose(x, (1, 0, 2))                     # (S, B, D)


# ----------------------------------------------------------------------------
if __name__ == "__main__":
    # NOTE: D=32 / Hff=64 / S=8 are demo sizes only (well below the 128-lane
    # vreg width); benchmark with realistic D/Hff before drawing perf numbers.
    VOCAB, DIM, HEADS, HIDDEN, LAYERS = 32, 32, 4, 64, 2
    S, B = 8, 2

    key = jax.random.PRNGKey(0)
    k_params, k_ids = jax.random.split(key)
    emb_table, layer_params, final_ln = init_params(k_params, VOCAB, DIM, LAYERS, HIDDEN)

    # token ids, seq-major (S, B); pad tail of the second sequence with NULL_ID
    input_ids = jax.random.randint(k_ids, (S, B), 1, VOCAB, dtype=jnp.int32)
    input_ids = input_ids.at[6:, 1].set(NULL_ID)
    lengths = jnp.array([S, 6], dtype=jnp.int32)

    emb, out = transformer_encoder(input_ids, lengths, emb_table, layer_params,
                                   final_ln, HEADS)
    jax.block_until_ready((emb, out))
    assert emb.shape == (S, B, DIM) and out.shape == (S, B, DIM)
    assert bool(jnp.all(jnp.isfinite(out)))

    # tolerance-asserted f32 reference (bf16 weights + approx reciprocal drift)
    ref = reference_encoder(input_ids, emb_table, layer_params, final_ln, HEADS)
    err = float(jnp.max(jnp.abs(out - ref)))
    assert err < 1e-1, f"max abs diff vs reference = {err}"
    print("KERNEL_OK")
</pallas_src>

<mosaic_0001>
module attributes {stable_mosaic.version = 11 : i64} {
  func.func @kernel(%arg0: i32, %arg1: i32, %arg2: memref<1x1x8xi32, #tpu.memory_space<vmem>>, %arg3: memref<1x8x32xf32, #tpu.memory_space<vmem>>, %arg4: memref<1x9x32xf32, #tpu.memory_space<vmem>>, %arg5: memref<1x32x32xbf16, #tpu.memory_space<vmem>>, %arg6: memref<1x32x32xbf16, #tpu.memory_space<vmem>>, %arg7: memref<1x32x32xbf16, #tpu.memory_space<vmem>>, %arg8: memref<1x4x8x32xbf16, #tpu.memory_space<vmem>>, %arg9: memref<1x32x64xbf16, #tpu.memory_space<vmem>>, %arg10: memref<1x1x64xf32, #tpu.memory_space<vmem>>, %arg11: memref<1x64x32xbf16, #tpu.memory_space<vmem>>, %arg12: memref<2x32xf32, #tpu.memory_space<vmem>>, %arg13: memref<1x8x32xf32, #tpu.memory_space<vmem>>, %arg14: memref<8x32xf32, #tpu.memory_space<vmem>>, %arg15: memref<1x1x8xf32, #tpu.memory_space<vmem>>) attributes {dimension_semantics = [#tpu.dimension_semantics<parallel>, #tpu.dimension_semantics<arbitrary>], iteration_bounds = array<i64: 2, 2>, scalar_prefetch = 0 : i64, scratch_operands = 2 : i64, tpu.core_type = #tpu.core_type<tc>, window_params = [{transform_indices = @transform_0, window_bounds = array<i64: 1, 1, 8>}, {transform_indices = @transform_1, window_bounds = array<i64: 1, 8, 32>}, {transform_indices = @transform_2, window_bounds = array<i64: 1, 9, 32>}, {transform_indices = @transform_3, window_bounds = array<i64: 1, 32, 32>}, {transform_indices = @transform_4, window_bounds = array<i64: 1, 32, 32>}, {transform_indices = @transform_5, window_bounds = array<i64: 1, 32, 32>}, {transform_indices = @transform_6, window_bounds = array<i64: 1, 4, 8, 32>}, {transform_indices = @transform_7, window_bounds = array<i64: 1, 32, 64>}, {transform_indices = @transform_8, window_bounds = array<i64: 1, 1, 64>}, {transform_indices = @transform_9, window_bounds = array<i64: 1, 64, 32>}, {pipeline_mode = #tpu.pipeline_mode<synchronous>, transform_indices = @transform_10, window_bounds = array<i64: 2, 32>}, {transform_indices = @transform_11, window_bounds = array<i64: 1, 8, 32>}]} {
    %c0_i32 = arith.constant 0 : i32
    %0 = arith.cmpi eq, %arg1, %c0_i32 : i32
    %1 = arith.extui %0 : i1 to i32
    %c0_i32_0 = arith.constant 0 : i32
    %2 = arith.cmpi ne, %1, %c0_i32_0 : i32
    scf.if %2 {
      %c0_56 = arith.constant 0 : index
      %c0_57 = arith.constant 0 : index
      %c0_58 = arith.constant 0 : index
      %153 = vector.load %arg3[%c0_56, %c0_57, %c0_58] : memref<1x8x32xf32, #tpu.memory_space<vmem>>, vector<1x8x32xf32>
      %154 = vector.shape_cast %153 : vector<1x8x32xf32> to vector<8x32xf32>
      %c0_59 = arith.constant 0 : index
      %c0_60 = arith.constant 0 : index
      %155 = vector.load %arg14[%c0_59, %c0_60] : memref<8x32xf32, #tpu.memory_space<vmem>>, vector<8x32xf32>
      tpu.vector_store %arg14[%c0_59, %c0_60], %154 {strides = array<i32>} : memref<8x32xf32, #tpu.memory_space<vmem>>, vector<8x32xf32>,
      %c0_61 = arith.constant 0 : index
      %c0_62 = arith.constant 0 : index
      %c0_63 = arith.constant 0 : index
      %156 = vector.load %arg2[%c0_61, %c0_62, %c0_63] : memref<1x1x8xi32, #tpu.memory_space<vmem>>, vector<1x1x8xi32>
      %c0_i32_64 = arith.constant 0 : i32
      %157 = vector.broadcast %c0_i32_64 : i32 to vector<1x1x8xi32>
      %158 = arith.cmpi eq, %156, %157 : vector<1x1x8xi32>
      %cst_65 = arith.constant -9.99999984E+17 : f32
      %cst_66 = arith.constant 0.000000e+00 : f32
      %159 = vector.broadcast %cst_65 : f32 to vector<1x1x8xf32>
      %160 = vector.broadcast %cst_66 : f32 to vector<1x1x8xf32>
      %161 = arith.select %158, %159, %160 : vector<1x1x8xi1>, vector<1x1x8xf32>
      %c0_67 = arith.constant 0 : index
      %c0_68 = arith.constant 0 : index
      %c0_69 = arith.constant 0 : index
      %162 = vector.load %arg15[%c0_67, %c0_68, %c0_69] : memref<1x1x8xf32, #tpu.memory_space<vmem>>, vector<1x1x8xf32>
      tpu.vector_store %arg15[%c0_67, %c0_68, %c0_69], %161 {strides = array<i32>} : memref<1x1x8xf32, #tpu.memory_space<vmem>>, vector<1x1x8xf32>,
    } else {
    }
    %c0 = arith.constant 0 : index
    %c0_1 = arith.constant 0 : index
    %3 = vector.load %arg14[%c0, %c0_1] : memref<8x32xf32, #tpu.memory_space<vmem>>, vector<8x32xf32>
    %c0_2 = arith.constant 0 : index
    %c0_3 = arith.constant 0 : index
    %c0_4 = arith.constant 0 : index
    %4 = vector.load %arg4[%c0_2, %c0_3, %c0_4] : memref<1x9x32xf32, #tpu.memory_space<vmem>>, vector<1x9x32xf32>
    %5 = vector.shape_cast %4 : vector<1x9x32xf32> to vector<9x32xf32>
    %6 = vector.extract_strided_slice %5 {offsets = [0, 0], sizes = [1, 32], strides = [1, 1]} : vector<9x32xf32> to vector<1x32xf32>
    %7 = vector.extract_strided_slice %5 {offsets = [1, 0], sizes = [1, 32], strides = [1, 1]} : vector<9x32xf32> to vector<1x32xf32>
    %8 = vector.extract_strided_slice %5 {offsets = [2, 0], sizes = [1, 32], strides = [1, 1]} : vector<9x32xf32> to vector<1x32xf32>
    %9 = vector.extract_strided_slice %5 {offsets = [3, 0], sizes = [1, 32], strides = [1, 1]} : vector<9x32xf32> to vector<1x32xf32>
    %10 = vector.extract_strided_slice %5 {offsets = [4, 0], sizes = [1, 32], strides = [1, 1]} : vector<9x32xf32> to vector<1x32xf32>
    %11 = vector.extract_strided_slice %5 {offsets = [5, 0], sizes = [1, 32], strides = [1, 1]} : vector<9x32xf32> to vector<1x32xf32>
    %12 = vector.extract_strided_slice %5 {offsets = [6, 0], sizes = [1, 32], strides = [1, 1]} : vector<9x32xf32> to vector<1x32xf32>
    %13 = vector.extract_strided_slice %5 {offsets = [7, 0], sizes = [1, 32], strides = [1, 1]} : vector<9x32xf32> to vector<1x32xf32>
    %14 = vector.extract_strided_slice %5 {offsets = [8, 0], sizes = [1, 32], strides = [1, 1]} : vector<9x32xf32> to vector<1x32xf32>
    %c0_5 = arith.constant 0 : index
    %c0_6 = arith.constant 0 : index
    %c0_7 = arith.constant 0 : index
    %15 = vector.load %arg15[%c0_5, %c0_6, %c0_7] : memref<1x1x8xf32, #tpu.memory_space<vmem>>, vector<1x1x8xf32>
    %c0_8 = arith.constant 0 : index
    %c0_9 = arith.constant 0 : index
    %c0_10 = arith.constant 0 : index
    %c0_11 = arith.constant 0 : index
    %16 = vector.load %arg8[%c0_8, %c0_9, %c0_10, %c0_11] : memref<1x4x8x32xbf16, #tpu.memory_space<vmem>>, vector<1x4x8x32xbf16>
    %17 = vector.shape_cast %16 : vector<1x4x8x32xbf16> to vector<4x8x32xbf16>
    %cst = arith.constant dense<0.000000e+00> : vector<8xf32>
    %18 = vector.multi_reduction <add>, %3, %cst [1] : vector<8x32xf32> to vector<8xf32>
    %19 = vector.shape_cast %18 : vector<8xf32> to vector<8x1xf32>
    %cst_12 = arith.constant 3.200000e+01 : f32
    %20 = vector.broadcast %cst_12 : f32 to vector<8x1xf32>
    %21 = arith.divf %19, %20 : vector<8x1xf32>
    %22 = vector.broadcast %21 : vector<8x1xf32> to vector<8x32xf32>
    %23 = arith.subf %3, %22 : vector<8x32xf32>
    %24 = arith.mulf %23, %23 : vector<8x32xf32>
    %cst_13 = arith.constant dense<0.000000e+00> : vector<8xf32>
    %25 = vector.multi_reduction <add>, %24, %cst_13 [1] : vector<8x32xf32> to vector<8xf32>
    %26 = vector.shape_cast %25 : vector<8xf32> to vector<8x1xf32>
    %cst_14 = arith.constant 0.0322580636 : f32
    %27 = vector.broadcast %cst_14 : f32 to vector<8x1xf32>
    %28 = arith.mulf %26, %27 : vector<8x1xf32>
    %29 = math.sqrt %28 : vector<8x1xf32>
    %cst_15 = arith.constant 9.99999997E-7 : f32
    %30 = vector.broadcast %cst_15 : f32 to vector<8x1xf32>
    %31 = arith.addf %29, %30 : vector<8x1xf32>
    %32 = tpu.reciprocal %31 : vector<8x1xf32> -> vector<8x1xf32>
    %33 = vector.broadcast %32 : vector<8x1xf32> to vector<8x32xf32>
    %34 = arith.mulf %23, %33 : vector<8x32xf32>
    %35 = vector.broadcast %6 : vector<1x32xf32> to vector<8x32xf32>
    %36 = arith.mulf %35, %34 : vector<8x32xf32>
    %37 = vector.broadcast %7 : vector<1x32xf32> to vector<8x32xf32>
    %38 = arith.addf %36, %37 : vector<8x32xf32>
    %39 = arith.truncf %38 : vector<8x32xf32> to vector<8x32xbf16>
    %c0_16 = arith.constant 0 : index
    %c0_17 = arith.constant 0 : index
    %c0_18 = arith.constant 0 : index
    %40 = vector.load %arg5[%c0_16, %c0_17, %c0_18] : memref<1x32x32xbf16, #tpu.memory_space<vmem>>, vector<1x32x32xbf16>
    %41 = vector.shape_cast %40 : vector<1x32x32xbf16> to vector<32x32xbf16>
    %cst_19 = arith.constant dense<0.000000e+00> : vector<8x32xf32>
    %42 = tpu.matmul %39, %41, %cst_19 {dimension_numbers = #tpu.dot_dimension_numbers<[1], [0], [0], [1], [0, 0, 1, 1], [], []>} : vector<8x32xbf16>, vector<32x32xbf16>, vector<8x32xf32> -> vector<8x32xf32>
    %43 = vector.broadcast %8 : vector<1x32xf32> to vector<8x32xf32>
    %44 = arith.addf %42, %43 : vector<8x32xf32>
    %c0_20 = arith.constant 0 : index
    %c0_21 = arith.constant 0 : index
    %c0_22 = arith.constant 0 : index
    %45 = vector.load %arg6[%c0_20, %c0_21, %c0_22] : memref<1x32x32xbf16, #tpu.memory_space<vmem>>, vector<1x32x32xbf16>
    %46 = vector.shape_cast %45 : vector<1x32x32xbf16> to vector<32x32xbf16>
    %cst_23 = arith.constant dense<0.000000e+00> : vector<8x32xf32>
    %47 = tpu.matmul %39, %46, %cst_23 {dimension_numbers = #tpu.dot_dimension_numbers<[1], [0], [0], [1], [0, 0, 1, 1], [], []>} : vector<8x32xbf16>, vector<32x32xbf16>, vector<8x32xf32> -> vector<8x32xf32>
    %48 = vector.broadcast %9 : vector<1x32xf32> to vector<8x32xf32>
    %49 = arith.addf %47, %48 : vector<8x32xf32>
    %c0_24 = arith.constant 0 : index
    %c0_25 = arith.constant 0 : index
    %c0_26 = arith.constant 0 : index
    %50 = vector.load %arg7[%c0_24, %c0_25, %c0_26] : memref<1x32x32xbf16, #tpu.memory_space<vmem>>, vector<1x32x32xbf16>
    %51 = vector.shape_cast %50 : vector<1x32x32xbf16> to vector<32x32xbf16>
    %cst_27 = arith.constant dense<0.000000e+00> : vector<8x32xf32>
    %52 = tpu.matmul %39, %51, %cst_27 {dimension_numbers = #tpu.dot_dimension_numbers<[1], [0], [0], [1], [0, 0, 1, 1], [], []>} : vector<8x32xbf16>, vector<32x32xbf16>, vector<8x32xf32> -> vector<8x32xf32>
    %53 = vector.broadcast %10 : vector<1x32xf32> to vector<8x32xf32>
    %54 = arith.addf %52, %53 : vector<8x32xf32>
    %55 = vector.shape_cast %44 : vector<8x32xf32> to vector<8x4x8xf32>
    %56 = tpu.transpose %55, [1, 0, 2] : vector<8x4x8xf32> -> vector<4x8x8xf32>
    %57 = arith.truncf %56 : vector<4x8x8xf32> to vector<4x8x8xbf16>
    %58 = vector.shape_cast %49 : vector<8x32xf32> to vector<8x4x8xf32>
    %59 = tpu.transpose %58, [1, 0, 2] : vector<8x4x8xf32> -> vector<4x8x8xf32>
    %60 = arith.truncf %59 : vector<4x8x8xf32> to vector<4x8x8xbf16>
    %61 = vector.shape_cast %54 : vector<8x32xf32> to vector<8x4x8xf32>
    %62 = tpu.transpose %61, [1, 0, 2] : vector<8x4x8xf32> -> vector<4x8x8xf32>
    %63 = arith.truncf %62 : vector<4x8x8xf32> to vector<4x8x8xbf16>
    "tpu.trace_start"() <{level = 10 : i32, message = "hqd,hkd->hqk"}> : () -> ()
    %cst_28 = arith.constant dense<0.000000e+00> : vector<4x8x8xf32>
    %64 = tpu.matmul %57, %60, %cst_28 {dimension_numbers = #tpu.dot_dimension_numbers<[2], [2], [1], [1], [0, 0, 0, 1, 1, 1], [0], [0]>} : vector<4x8x8xbf16>, vector<4x8x8xbf16>, vector<4x8x8xf32> -> vector<4x8x8xf32>
    "tpu.trace_stop"() : () -> ()
    %65 = vector.shape_cast %15 : vector<1x1x8xf32> to vector<1x8xf32>
    %66 = vector.shape_cast %65 : vector<1x8xf32> to vector<1x1x8xf32>
    %67 = vector.broadcast %66 : vector<1x1x8xf32> to vector<4x8x8xf32>
    %68 = arith.addf %64, %67 : vector<4x8x8xf32>
    %cst_29 = arith.constant dense<0xFF800000> : vector<4x8xf32>
    %69 = vector.multi_reduction <maximumf>, %68, %cst_29 [2] : vector<4x8x8xf32> to vector<4x8xf32>
    %70 = vector.shape_cast %69 : vector<4x8xf32> to vector<4x8x1xf32>
    %71 = vector.broadcast %70 : vector<4x8x1xf32> to vector<4x8x8xf32>
    %72 = arith.subf %68, %71 : vector<4x8x8xf32>
    %73 = math.exp %72 : vector<4x8x8xf32>
    %cst_30 = arith.constant dense<0.000000e+00> : vector<4x8xf32>
    %74 = vector.multi_reduction <add>, %73, %cst_30 [2] : vector<4x8x8xf32> to vector<4x8xf32>
    %75 = vector.shape_cast %74 : vector<4x8xf32> to vector<4x8x1xf32>
    %76 = tpu.reciprocal %75 {approx = true} : vector<4x8x1xf32> -> vector<4x8x1xf32>
    %77 = vector.broadcast %76 : vector<4x8x1xf32> to vector<4x8x8xf32>
    %78 = arith.mulf %73, %77 : vector<4x8x8xf32>
    %79 = arith.truncf %78 : vector<4x8x8xf32> to vector<4x8x8xbf16>
    "tpu.trace_start"() <{level = 10 : i32, message = "hqk,hkd->hqd"}> : () -> ()
    %cst_31 = arith.constant dense<0.000000e+00> : vector<4x8x8xf32>
    %80 = tpu.matmul %79, %63, %cst_31 {dimension_numbers = #tpu.dot_dimension_numbers<[2], [1], [1], [2], [0, 0, 0, 1, 1, 2], [0], [0]>} : vector<4x8x8xbf16>, vector<4x8x8xbf16>, vector<4x8x8xf32> -> vector<4x8x8xf32>
    "tpu.trace_stop"() : () -> ()
    %81 = vector.extract_strided_slice %80 {offsets = [0, 0, 0], sizes = [1, 8, 8], strides = [1, 1, 1]} : vector<4x8x8xf32> to vector<1x8x8xf32>
    %82 = vector.shape_cast %81 : vector<1x8x8xf32> to vector<8x8xf32>
    %83 = arith.truncf %82 : vector<8x8xf32> to vector<8x8xbf16>
    %84 = vector.extract_strided_slice %17 {offsets = [0, 0, 0], sizes = [1, 8, 32], strides = [1, 1, 1]} : vector<4x8x32xbf16> to vector<1x8x32xbf16>
    %85 = vector.shape_cast %84 : vector<1x8x32xbf16> to vector<8x32xbf16>
    %cst_32 = arith.constant dense<0.000000e+00> : vector<8x32xf32>
    %86 = tpu.matmul %83, %85, %cst_32 {dimension_numbers = #tpu.dot_dimension_numbers<[1], [0], [0], [1], [0, 0, 1, 1], [], []>} : vector<8x8xbf16>, vector<8x32xbf16>, vector<8x32xf32> -> vector<8x32xf32>
    %87 = vector.extract_strided_slice %80 {offsets = [1, 0, 0], sizes = [1, 8, 8], strides = [1, 1, 1]} : vector<4x8x8xf32> to vector<1x8x8xf32>
    %88 = vector.shape_cast %87 : vector<1x8x8xf32> to vector<8x8xf32>
    %89 = arith.truncf %88 : vector<8x8xf32> to vector<8x8xbf16>
    %90 = vector.extract_strided_slice %17 {offsets = [1, 0, 0], sizes = [1, 8, 32], strides = [1, 1, 1]} : vector<4x8x32xbf16> to vector<1x8x32xbf16>
    %91 = vector.shape_cast %90 : vector<1x8x32xbf16> to vector<8x32xbf16>
    %cst_33 = arith.constant dense<0.000000e+00> : vector<8x32xf32>
    %92 = tpu.matmul %89, %91, %cst_33 {dimension_numbers = #tpu.dot_dimension_numbers<[1], [0], [0], [1], [0, 0, 1, 1], [], []>} : vector<8x8xbf16>, vector<8x32xbf16>, vector<8x32xf32> -> vector<8x32xf32>
    %93 = arith.addf %86, %92 : vector<8x32xf32>
    %94 = vector.extract_strided_slice %80 {offsets = [2, 0, 0], sizes = [1, 8, 8], strides = [1, 1, 1]} : vector<4x8x8xf32> to vector<1x8x8xf32>
    %95 = vector.shape_cast %94 : vector<1x8x8xf32> to vector<8x8xf32>
    %96 = arith.truncf %95 : vector<8x8xf32> to vector<8x8xbf16>
    %97 = vector.extract_strided_slice %17 {offsets = [2, 0, 0], sizes = [1, 8, 32], strides = [1, 1, 1]} : vector<4x8x32xbf16> to vector<1x8x32xbf16>
    %98 = vector.shape_cast %97 : vector<1x8x32xbf16> to vector<8x32xbf16>
    %cst_34 = arith.constant dense<0.000000e+00> : vector<8x32xf32>
    %99 = tpu.matmul %96, %98, %cst_34 {dimension_numbers = #tpu.dot_dimension_numbers<[1], [0], [0], [1], [0, 0, 1, 1], [], []>} : vector<8x8xbf16>, vector<8x32xbf16>, vector<8x32xf32> -> vector<8x32xf32>
    %100 = arith.addf %93, %99 : vector<8x32xf32>
    %101 = vector.extract_strided_slice %80 {offsets = [3, 0, 0], sizes = [1, 8, 8], strides = [1, 1, 1]} : vector<4x8x8xf32> to vector<1x8x8xf32>
    %102 = vector.shape_cast %101 : vector<1x8x8xf32> to vector<8x8xf32>
    %103 = arith.truncf %102 : vector<8x8xf32> to vector<8x8xbf16>
    %104 = vector.extract_strided_slice %17 {offsets = [3, 0, 0], sizes = [1, 8, 32], strides = [1, 1, 1]} : vector<4x8x32xbf16> to vector<1x8x32xbf16>
    %105 = vector.shape_cast %104 : vector<1x8x32xbf16> to vector<8x32xbf16>
    %cst_35 = arith.constant dense<0.000000e+00> : vector<8x32xf32>
    %106 = tpu.matmul %103, %105, %cst_35 {dimension_numbers = #tpu.dot_dimension_numbers<[1], [0], [0], [1], [0, 0, 1, 1], [], []>} : vector<8x8xbf16>, vector<8x32xbf16>, vector<8x32xf32> -> vector<8x32xf32>
    %107 = arith.addf %100, %106 : vector<8x32xf32>
    %108 = vector.broadcast %11 : vector<1x32xf32> to vector<8x32xf32>
    %109 = arith.addf %107, %108 : vector<8x32xf32>
    %110 = arith.addf %109, %3 : vector<8x32xf32>
    %cst_36 = arith.constant dense<0.000000e+00> : vector<8xf32>
    %111 = vector.multi_reduction <add>, %110, %cst_36 [1] : vector<8x32xf32> to vector<8xf32>
    %112 = vector.shape_cast %111 : vector<8xf32> to vector<8x1xf32>
    %cst_37 = arith.constant 3.200000e+01 : f32
    %113 = vector.broadcast %cst_37 : f32 to vector<8x1xf32>
    %114 = arith.divf %112, %113 : vector<8x1xf32>
    %115 = vector.broadcast %114 : vector<8x1xf32> to vector<8x32xf32>
    %116 = arith.subf %110, %115 : vector<8x32xf32>
    %117 = arith.mulf %116, %116 : vector<8x32xf32>
    %cst_38 = arith.constant dense<0.000000e+00> : vector<8xf32>
    %118 = vector.multi_reduction <add>, %117, %cst_38 [1] : vector<8x32xf32> to vector<8xf32>
    %119 = vector.shape_cast %118 : vector<8xf32> to vector<8x1xf32>
    %cst_39 = arith.constant 0.0322580636 : f32
    %120 = vector.broadcast %cst_39 : f32 to vector<8x1xf32>
    %121 = arith.mulf %119, %120 : vector<8x1xf32>
    %122 = math.sqrt %121 : vector<8x1xf32>
    %cst_40 = arith.constant 9.99999997E-7 : f32
    %123 = vector.broadcast %cst_40 : f32 to vector<8x1xf32>
    %124 = arith.addf %122, %123 : vector<8x1xf32>
    %125 = tpu.reciprocal %124 : vector<8x1xf32> -> vector<8x1xf32>
    %126 = vector.broadcast %125 : vector<8x1xf32> to vector<8x32xf32>
    %127 = arith.mulf %116, %126 : vector<8x32xf32>
    %128 = vector.broadcast %12 : vector<1x32xf32> to vector<8x32xf32>
    %129 = arith.mulf %128, %127 : vector<8x32xf32>
    %130 = vector.broadcast %13 : vector<1x32xf32> to vector<8x32xf32>
    %131 = arith.addf %129, %130 : vector<8x32xf32>
    %132 = arith.truncf %131 : vector<8x32xf32> to vector<8x32xbf16>
    %c0_41 = arith.constant 0 : index
    %c0_42 = arith.constant 0 : index
    %c0_43 = arith.constant 0 : index
    %133 = vector.load %arg9[%c0_41, %c0_42, %c0_43] : memref<1x32x64xbf16, #tpu.memory_space<vmem>>, vector<1x32x64xbf16>
    %134 = vector.shape_cast %133 : vector<1x32x64xbf16> to vector<32x64xbf16>
    %cst_44 = arith.constant dense<0.000000e+00> : vector<8x64xf32>
    %135 = tpu.matmul %132, %134, %cst_44 {dimension_numbers = #tpu.dot_dimension_numbers<[1], [0], [0], [1], [0, 0, 1, 1], [], []>} : vector<8x32xbf16>, vector<32x64xbf16>, vector<8x64xf32> -> vector<8x64xf32>
    %c0_45 = arith.constant 0 : index
    %c0_46 = arith.constant 0 : index
    %c0_47 = arith.constant 0 : index
    %136 = vector.load %arg10[%c0_45, %c0_46, %c0_47] : memref<1x1x64xf32, #tpu.memory_space<vmem>>, vector<1x1x64xf32>
    %137 = vector.shape_cast %136 : vector<1x1x64xf32> to vector<1x64xf32>
    %138 = vector.broadcast %137 : vector<1x64xf32> to vector<8x64xf32>
    %139 = arith.addf %135, %138 : vector<8x64xf32>
    %cst_48 = arith.constant 0.000000e+00 : f32
    %140 = vector.broadcast %cst_48 : f32 to vector<8x64xf32>
    %141 = arith.maximumf %139, %140 : vector<8x64xf32>
    %142 = arith.truncf %141 : vector<8x64xf32> to vector<8x64xbf16>
    %c0_49 = arith.constant 0 : index
    %c0_50 = arith.constant 0 : index
    %c0_51 = arith.constant 0 : index
    %143 = vector.load %arg11[%c0_49, %c0_50, %c0_51] : memref<1x64x32xbf16, #tpu.memory_space<vmem>>, vector<1x64x32xbf16>
    %144 = vector.shape_cast %143 : vector<1x64x32xbf16> to vector<64x32xbf16>
    %cst_52 = arith.constant dense<0.000000e+00> : vector<8x32xf32>
    %145 = tpu.matmul %142, %144, %cst_52 {dimension_numbers = #tpu.dot_dimension_numbers<[1], [0], [0], [1], [0, 0, 1, 1], [], []>} : vector<8x64xbf16>, vector<64x32xbf16>, vector<8x32xf32> -> vector<8x32xf32>
    %146 = vector.broadcast %14 : vector<1x32xf32> to vector<8x32xf32>
    %147 = arith.addf %145, %146 : vector<8x32xf32>
    %148 = arith.addf %147, %110 : vector<8x32xf32>
    %c0_53 = arith.constant 0 : index
    %c0_54 = arith.constant 0 : index
    %149 = vector.load %arg14[%c0_53, %c0_54] : memref<8x32xf32, #tpu.memory_space<vmem>>, vector<8x32xf32>
    tpu.vector_store %arg14[%c0_53, %c0_54], %148 {strides = array<i32>} : memref<8x32xf32, #tpu.memory_space<vmem>>, vector<8x32xf32>,
    %c1_i32 = arith.constant 1 : i32
    %150 = arith.cmpi eq, %arg1, %c1_i32 : i32
    %151 = arith.extui %150 : i1 to i32
    %c0_i32_55 = arith.constant 0 : i32
    %152 = arith.cmpi ne, %151, %c0_i32_55 : i32
    scf.if %152 {
      %c0_56 = arith.constant 0 : index
      %c0_57 = arith.constant 0 : index
      %153 = vector.load %arg12[%c0_56, %c0_57] : memref<2x32xf32, #tpu.memory_space<vmem>>, vector<2x32xf32>
      %154 = vector.extract_strided_slice %153 {offsets = [0, 0], sizes = [1, 32], strides = [1, 1]} : vector<2x32xf32> to vector<1x32xf32>
      %155 = vector.extract_strided_slice %153 {offsets = [1, 0], sizes = [1, 32], strides = [1, 1]} : vector<2x32xf32> to vector<1x32xf32>
      %cst_58 = arith.constant dense<0.000000e+00> : vector<8xf32>
      %156 = vector.multi_reduction <add>, %148, %cst_58 [1] : vector<8x32xf32> to vector<8xf32>
      %157 = vector.shape_cast %156 : vector<8xf32> to vector<8x1xf32>
      %cst_59 = arith.constant 3.200000e+01 : f32
      %158 = vector.broadcast %cst_59 : f32 to vector<8x1xf32>
      %159 = arith.divf %157, %158 : vector<8x1xf32>
      %160 = vector.broadcast %159 : vector<8x1xf32> to vector<8x32xf32>
      %161 = arith.subf %148, %160 : vector<8x32xf32>
      %162 = arith.mulf %161, %161 : vector<8x32xf32>
      %cst_60 = arith.constant dense<0.000000e+00> : vector<8xf32>
      %163 = vector.multi_reduction <add>, %162, %cst_60 [1] : vector<8x32xf32> to vector<8xf32>
      %164 = vector.shape_cast %163 : vector<8xf32> to vector<8x1xf32>
      %cst_61 = arith.constant 0.0322580636 : f32
      %165 = vector.broadcast %cst_61 : f32 to vector<8x1xf32>
      %166 = arith.mulf %164, %165 : vector<8x1xf32>
      %167 = math.sqrt %166 : vector<8x1xf32>
      %cst_62 = arith.constant 9.99999997E-7 : f32
      %168 = vector.broadcast %cst_62 : f32 to vector<8x1xf32>
      %169 = arith.addf %167, %168 : vector<8x1xf32>
      %170 = tpu.reciprocal %169 : vector<8x1xf32> -> vector<8x1xf32>
      %171 = vector.broadcast %170 : vector<8x1xf32> to vector<8x32xf32>
      %172 = arith.mulf %161, %171 : vector<8x32xf32>
      %173 = vector.broadcast %154 : vector<1x32xf32> to vector<8x32xf32>
      %174 = arith.mulf %173, %172 : vector<8x32xf32>
      %175 = vector.broadcast %155 : vector<1x32xf32> to vector<8x32xf32>
      %176 = arith.addf %174, %175 : vector<8x32xf32>
      %177 = vector.shape_cast %176 : vector<8x32xf32> to vector<1x8x32xf32>
      %c0_63 = arith.constant 0 : index
      %c0_64 = arith.constant 0 : index
      %c0_65 = arith.constant 0 : index
      %178 = vector.load %arg13[%c0_63, %c0_64, %c0_65] : memref<1x8x32xf32, #tpu.memory_space<vmem>>, vector<1x8x32xf32>
      tpu.vector_store %arg13[%c0_63, %c0_64, %c0_65], %177 {strides = array<i32>} : memref<1x8x32xf32, #tpu.memory_space<vmem>>, vector<1x8x32xf32>,
    } else {
    }
    return
  }
  func.func @transform_0(%arg0: i32, %arg1: i32) -> (i32, i32, i32) {
    %c0_i32 = arith.constant 0 : i32
    %c0_i32_0 = arith.constant 0 : i32
    %c0_i32_1 = arith.constant 0 : i32
    return %arg0, %c0_i32, %c0_i32_0 : i32, i32, i32
  }
  func.func @transform_1(%arg0: i32, %arg1: i32) -> (i32, i32, i32) {
    %c0_i32 = arith.constant 0 : i32
    %c0_i32_0 = arith.constant 0 : i32
    %c0_i32_1 = arith.constant 0 : i32
    return %arg0, %c0_i32, %c0_i32_0 : i32, i32, i32
  }
  func.func @transform_2(%arg0: i32, %arg1: i32) -> (i32, i32, i32) {
    %c0_i32 = arith.constant 0 : i32
    %c0_i32_0 = arith.constant 0 : i32
    %c0_i32_1 = arith.constant 0 : i32
    return %arg1, %c0_i32, %c0_i32_0 : i32, i32, i32
  }
  func.func @transform_3(%arg0: i32, %arg1: i32) -> (i32, i32, i32) {
    %c0_i32 = arith.constant 0 : i32
    %c0_i32_0 = arith.constant 0 : i32
    %c0_i32_1 = arith.constant 0 : i32
    return %arg1, %c0_i32, %c0_i32_0 : i32, i32, i32
  }
  func.func @transform_4(%arg0: i32, %arg1: i32) -> (i32, i32, i32) {
    %c0_i32 = arith.constant 0 : i32
    %c0_i32_0 = arith.constant 0 : i32
    %c0_i32_1 = arith.constant 0 : i32
    return %arg1, %c0_i32, %c0_i32_0 : i32, i32, i32
  }
  func.func @transform_5(%arg0: i32, %arg1: i32) -> (i32, i32, i32) {
    %c0_i32 = arith.constant 0 : i32
    %c0_i32_0 = arith.constant 0 : i32
    %c0_i32_1 = arith.constant 0 : i32
    return %arg1, %c0_i32, %c0_i32_0 : i32, i32, i32
  }
  func.func @transform_6(%arg0: i32, %arg1: i32) -> (i32, i32, i32, i32) {
    %c0_i32 = arith.constant 0 : i32
    %c0_i32_0 = arith.constant 0 : i32
    %c0_i32_1 = arith.constant 0 : i32
    %c0_i32_2 = arith.constant 0 : i32
    return %arg1, %c0_i32, %c0_i32_0, %c0_i32_1 : i32, i32, i32, i32
  }
  func.func @transform_7(%arg0: i32, %arg1: i32) -> (i32, i32, i32) {
    %c0_i32 = arith.constant 0 : i32
    %c0_i32_0 = arith.constant 0 : i32
    %c0_i32_1 = arith.constant 0 : i32
    return %arg1, %c0_i32, %c0_i32_0 : i32, i32, i32
  }
  func.func @transform_8(%arg0: i32, %arg1: i32) -> (i32, i32, i32) {
    %c0_i32 = arith.constant 0 : i32
    %c0_i32_0 = arith.constant 0 : i32
    %c0_i32_1 = arith.constant 0 : i32
    return %arg1, %c0_i32, %c0_i32_0 : i32, i32, i32
  }
  func.func @transform_9(%arg0: i32, %arg1: i32) -> (i32, i32, i32) {
    %c0_i32 = arith.constant 0 : i32
    %c0_i32_0 = arith.constant 0 : i32
    %c0_i32_1 = arith.constant 0 : i32
    return %arg1, %c0_i32, %c0_i32_0 : i32, i32, i32
  }
  func.func @transform_10(%arg0: i32, %arg1: i32) -> (i32, i32) {
    %c0_i32 = arith.constant 0 : i32
    %c0_i32_0 = arith.constant 0 : i32
    %c0_i32_1 = arith.constant 0 : i32
    return %c0_i32, %c0_i32_0 : i32, i32
  }
  func.func @transform_11(%arg0: i32, %arg1: i32) -> (i32, i32, i32) {
    %c0_i32 = arith.constant 0 : i32
    %c0_i32_0 = arith.constant 0 : i32
    %c0_i32_1 = arith.constant 0 : i32
    return %arg0, %c0_i32, %c0_i32_0 : i32, i32, i32
  }
}

</mosaic_0001>

<bundles_post_ra>
// kernel: tpu_custom_call.1
= control target key start
LH: loop header
LB: loop body
LE: loop exit
PB: predicated region body
PF: predicated region fallthrough
CT: control target
= control target key end

     0   :  { %s3689_s0 = inlined_call_operand.hbm [shape: s32[2,1,8], index: 0, kind: input, shape index: {}]   ;;  %s3690_s1 = inlined_call_operand.hbm [shape: f32[2,8,32], index: 1, kind: input, shape index: {}]   ;;  %s3691_s2 = inlined_call_operand.vmem [shape: f32[2,9,32], index: 2, kind: input, shape index: {}]   ;;  %s3692_s3 = inlined_call_operand.vmem [shape: bf16[2,32,32], index: 3, kind: input, shape index: {}]   ;;  %s3693_s4 = inlined_call_operand.vmem [shape: bf16[2,32,32], index: 4, kind: input, shape index: {}]   ;;  %s3694_s5 = inlined_call_operand.vmem [shape: bf16[2,32,32], index: 5, kind: input, shape index: {}]   ;;  %s3695_s6 = inlined_call_operand.vmem [shape: bf16[2,4,8,32], index: 6, kind: input, shape index: {}]   ;;  %s3696_s7 = inlined_call_operand.hbm [shape: bf16[2,32,64], index: 7, kind: input, shape index: {}]   ;;  %s3697_s8 = inlined_call_operand.hbm [shape: f32[2,1,64], index: 8, kind: input, shape index: {}]   ;;  %s3698_s9 = inlined_call_operand.vmem [shape: bf16[2,64,32], index: 9, kind: input, shape index: {}]   ;;  %s3699_s10 = inlined_call_operand.vmem [shape: f32[2,32], index: 10, kind: input, shape index: {}]   ;;  %s3700_s11 = inlined_call_operand.hbm [shape: f32[2,8,32], index: 11, kind: output, shape index: {}]  }
   0x1   :  { %3714 = sst [smem:[#allocation29_spill]] %s3689_s0 }
   0x2   :  { %3715 = sst [smem:[#allocation30_spill]] %s3690_s1 }
   0x3   :  { %3716 = sst [smem:[#allocation31_spill]] %s3691_s2 }
   0x4   :  { %3717 = sst [smem:[#allocation32_spill]] %s3692_s3 }
   0x5   :  { %3718 = sst [smem:[#allocation33_spill]] %s3694_s5 }
   0x6   :  { %3719 = sst [smem:[#allocation34_spill]] %s3695_s6 }
   0x7   :  { %3720 = sst [smem:[#allocation35_spill]] %s3696_s7 }
   0x8   :  { %3721 = sst [smem:[#allocation36_spill]] %s3697_s8 }
   0x9   :  { %3722 = sst [smem:[#allocation37_spill]] %s3698_s9 }
   0xa   :  { %3723 = sst [smem:[#allocation38_spill]] %s3699_s10 }
   0xb   :  { %3724 = sst [smem:[#allocation39_spill]] %s3700_s11 }
   0xc   :  { %16 = vsyncpa [#allocation5], 0 }
   0xd   :  { %18 = vsyncpa [#allocation5 + $0x1], 0 }
   0xe   :  { %19 = vsyncpa [#allocation8], 0 }
   0xf   :  { %21 = vsyncpa [#allocation8 + $0x1], 0 }
  0x10   :  { %22 = vsyncpa [#allocation11], 0 }
  0x11   :  { %24 = vsyncpa [#allocation11 + $0x1], 0 }
  0x12   :  { %25 = vsyncpa [#allocation6], 0 }
  0x13   :  { %27 = vsyncpa [#allocation6 + $0x1], 0  ;;  %s3113_s17 = smov 0   ;;  %s3115_s18 = smov 0  }
  0x14   :  { %s3117_s19 = smov 0   ;;  %s3119_s20 = smov 0  }
  0x15   :  { %s3121_s21 = smov 0   ;;  %s3123_s22 = smov 0  }
  0x16   :  { %s3125_s23 = smov 0   ;;  %s3127_s24 = smov 0  }
  0x17   :  { %s3129_s25 = smov 0   ;;  %s3131_s26 = smov 0  }
  0x18   :  { %s3133_s27 = smov 0  }
  0x19 LB: > { %3725 = sst [smem:[#allocation18_spill]] %s3008_s20  ;;  %s3169_s28 = sadd.s32 4294967295, %s3036_s27   ;;  %s3036_s27 = sphi %s3133_s27, %s33_s27   ;;  %s3032_s26 = sphi %s3131_s26, %s3770_s26   ;;  %s3028_s25 = sphi %s3129_s25, %s3777_s25   ;;  %s3024_s24 = sphi %s3127_s24, %s3768_s24   ;;  %s3020_s23 = sphi %s3125_s23, %s3776_s23   ;;  %s3016_s22 = sphi %s3123_s22, %s3767_s22   ;;  %s3012_s21 = sphi %s3121_s21, %s3775_s21   ;;  %s3008_s20 = sphi %s3119_s20, %s3774_s20   ;;  %s3004_s19 = sphi %s3117_s19, %s3773_s19   ;;  %s3000_s18 = sphi %s3115_s18, %s3772_s18   ;;  %s2996_s17 = sphi %s3113_s17, %s3771_s17  }
  0x1a   : > { %3726 = sst [smem:[#allocation19_spill]] %s3016_s22  ;;  %s2391_s29 = sadd.s32 4294967294, %s3036_s27  }
  0x1b   : > { %3727 = sst [smem:[#allocation20_spill]] %s3024_s24  ;;  %s42_s30 = sadd.s32 1, %s3028_s25 }
  0x1c   : > { %3728 = sst [smem:[#allocation21_spill]] %s3032_s26  ;;  %s45_s12 = sadd.s32 1, %s3032_s26 }
  0x1d   : > { %3729 = sst [smem:[#allocation22_spill]] %s3036_s27  ;;  %p43_p0 = scmp.ge.s32.totalorder %s42_s30, 2 }
  0x1e   : > { %s52_s13 = sadd.s32 1, %s3016_s22  ;;  %p59_p1 = scmp.ne.s32.totalorder %s3016_s22, %s3012_s21 }
  0x1f   : > { %p60_p2 = scmp.eq.s32.totalorder %s3036_s27, 0  ;;  %s3779_s30 = smov (%p43_p0, %s42_s30), 0 }
  0x20   : > { %3730 = sst [smem:[#allocation23_spill]] %s3779_s30  ;;  %s3781_s12 = smov (!%p43_p0, %s45_s12), %s3032_s26 }
  0x21   : > { %p3186_p3 = por %p60_p2, %p59_p1  ;;  %p3703_p4 = scmp.ne.s32.totalorder %s3012_s21, %s3008_s20 }
  0x22   : > { %p47_p5 = scmp.ge.s32.totalorder %s3781_s12, 2  ;;  %p66_p6 = scmp.eq.s32.totalorder %s3169_s28, 0 }
  0x23   : > { %s231_s15 = ssub.s32 %s3028_s25, %s3779_s30  ;;  %s234_s16 = sadd.s32 1, %s3004_s19 }
  0x24   : > { %s3783_s12 = smov (%p47_p5, %s3781_s12), 0  ;;  %p3203_p7 = por %p66_p6, %p3703_p4 }
  0x25   : > { %3732 = sst [smem:[#allocation24_spill]] %s3783_s12  ;;  %p232_p8 = scmp.eq.s32.totalorder %s231_s15, 0 }
  0x26   : > { %s3733_s11 = scalar_select %p3203_p7, 1, 0 }
  0x27   : > { %s49_s24 = ssub.s32 %s3032_s26, %s3783_s12  ;;  %p241_p9 = scmp.ne.s32.totalorder %s3004_s19, %s3000_s18 }
  0x28   : > { %p50_p10 = scmp.eq.s32.totalorder %s49_s24, 0  ;;  %p247_p11 = scmp.ne.s32.totalorder %s3000_s18, %s2996_s17 }
  0x29   : > { %s3214_s30 = scalar_select %p232_p8, %s3004_s19, %s234_s16  }
  0x2a   : > { %s3217_s10 = scalar_select %p50_p10, %s3016_s22, %s52_s13  }
  0x2b   : > { %3734 = sst [smem:[#allocation25_spill]] %s3214_s30  ;;  %p3221_p12 = por %p241_p9, %p60_p2 }
  0x2c   : > { %3735 = sst [smem:[#allocation26_spill]] %s3217_s10  ;;  %p3227_p13 = por %p247_p11, %p66_p6 }
  0x2d   : > { %p344_p0 = scmp.eq.s32.totalorder %s3169_s28, 3  ;;  %p350_p5 = scmp.eq.s32.totalorder %s2391_s29, 3 }
  0x2e   : > { %p2652_p4 = scmp.lt.s32.totalorder %s3036_s27, 4  ;;  %p3740_p8 = scmp.ne.s32.totalorder %s3012_s21, %s3008_s20 }
  0x2f   : > { %p3236_p7 = por %p344_p0, %p59_p1  ;;  %s3248_s13 = sand.u32 1, %s3016_s22  }
  0x30   : > { %p3243_p10 = por %p350_p5, %p3740_p8  ;;  %p3252_p2 = pnand %p2652_p4, %p3186_p3 }
  0x31   : > { %s3738_s17 = scalar_select %p3236_p7, 1, 0 }
  0x32   : > { %s3741_s24 = scalar_select %p3243_p10, 1, 0 }
  0x33   : > { %3739 = sst [smem:[#allocation27_spill]] %s3738_s17  ;;  %s390_s29 = sand.u32 1, %s3036_s27  }
  0x34   : > { %3742 = sst [smem:[#allocation28_spill]] %s3741_s24  ;;  %s2395_s16 = sshll.u32 %s3248_s13, 3 }
  0x35   : > { %s2396_s12 = sshll.u32 %s3032_s26, 7  ;;  %s3744_s1 = sld [smem:[#allocation30_spill]] }
  0x36   : > { %s394_s17 = scalar_lea.vmem [#allocation7], %s2395_s16  ;;  %p3264_p1 = pnand %p2652_p4, %p3221_p12 }
  0x37   : > { %s401_s5 = sshll.u32 %s394_s17, 4  ;;  %s3268_s22 = scalar_lea.sflag [#allocation8], %s390_s29  ;;  %s402_s5 = int_to_ptr.vmem [resolvable:$true] %s401_s5 }
  0x38   : > { %p2794_p3 = pneg %p3252_p2  ;;  %s2805_s24 = scalar_lea.vmem %s402_s5, 128 }
  0x39   : > { %p2806_p6 = scmp.ne.s32.totalorder %s402_s5, %s2805_s24  ;;  %s3038_s10 = smov [#allocation7]  }
  0x3a   : > { %s2810_s30 = sshll.u32 %s3038_s10, 4  ;;  %s2811_s30 = int_to_ptr.vmem [resolvable:$false] %s2810_s30 }
  0x3b   : > { %s399_s20 = scalar_lea.hbm %s3744_s1, %s2396_s12  ;;  %p2808_p9 = pnand %p2806_p6, %p2794_p3 }
  0x3c   : > { %s2812_s12 = scalar_lea.vmem %s2811_s30, 256  ;;  %p2813_p0 = scmp.lt.s32.totalorder %s402_s5, %s2811_s30 }
  0x3d   : > { %p2809_p11 = pneg %p2808_p9  ;;  %p2814_p5 = scmp.lt.s32.totalorder %s2812_s12, %s2805_s24 }
  0x3f   : > { %p2815_p4 = por %p2814_p5, %p2813_p0 }
  0x41   : > { %p2816_p12 = pnand %p2815_p4, %p2809_p11 }
  0x43   : > { %2819 = shalt.err (!%p2816_p12)
}
  0x44   : > { %2641 = dma.hbm_to_vmem [thread:$0]  (!%p3252_p2), %s399_s20, 128, %s402_s5, %s3268_s22  }
  0x45   : > { %p2401_p8 = scmp.ge.s32.totalorder %s3036_s27, 1  ;;  %p492_p6 = scmp.lt.s32.totalorder %s3036_s27, 5 }
  0x46   : > { %s2394_s17 = sshll.u32 %s3032_s26, 4  ;;  %s376_s24 = scalar_lea.vmem [#allocation4], %s3248_s13 }
  0x47   : > { %p3280_p9 = pnand %p2401_p8, %p492_p6  ;;  %s383_s29 = sshll.u32 %s376_s24, 4  ;;  %s384_s29 = int_to_ptr.vmem [resolvable:$true] %s383_s29 }
  0x48   : > { %s3747_s0 = sld [smem:[#allocation29_spill]]  ;;  %s374_s12 = scalar_lea.sflag [#allocation5], %s3248_s13 }
  0x49   : > { %s2833_s1 = scalar_lea.vmem %s384_s29, 16  ;;  %s3039_s5 = smov [#allocation4]  }
  0x4a   : > { %p2834_p11 = scmp.ne.s32.totalorder %s384_s29, %s2833_s1  ;;  %s2838_s20 = sshll.u32 %s3039_s5, 4  ;;  %s2839_s20 = int_to_ptr.vmem [resolvable:$false] %s2838_s20 }
  0x4b   : > { %s2840_s27 = scalar_lea.vmem %s2839_s20, 32  ;;  %p2841_p4 = scmp.lt.s32.totalorder %s384_s29, %s2839_s20 }
  0x4c   : > { %p2836_p0 = pnand %p2834_p11, %p2794_p3  ;;  %p2842_p12 = scmp.lt.s32.totalorder %s2840_s27, %s2833_s1 }
  0x4e   : > { %s381_s30 = scalar_lea.hbm %s3747_s0, %s2394_s17  ;;  %p2837_p5 = pneg %p2836_p0 }
  0x4f   : > { %p2843_p8 = por %p2842_p12, %p2841_p4 }
  0x51   : > { %p2844_p6 = pnand %p2843_p8, %p2837_p5 }
  0x53   : > { %2847 = shalt.err (!%p2844_p6)
}
  0x54   : > { %2638 = dma.hbm_to_vmem [thread:$0]  (!%p3252_p2), %s381_s30, 16, %s384_s29, %s374_s12  }
  0x55   : > { %s3296_s13 = sand.u32 1, %s3004_s19   ;;  %s2461_s17 = sshll.u32 %s3028_s25, 8 }
  0x56   : > { %s2397_s24 = sshll.u32 %s3296_s13, 4  ;;  %s3748_s7 = sld [smem:[#allocation35_spill]] }
  0x57   : > { %s452_s1 = scalar_lea.vmem [#allocation9], %s2397_s24  ;;  %p2850_p3 = pneg %p3264_p1 }
  0x58   : > { %s459_s27 = sshll.u32 %s452_s1, 4  ;;  %s3040_s29 = smov [#allocation9]   ;;  %s460_s27 = int_to_ptr.vmem [resolvable:$true] %s459_s27 }
  0x59   : > { %s2861_s15 = scalar_lea.vmem %s460_s27, 256  ;;  %s2866_s30 = sshll.u32 %s3040_s29, 4  ;;  %s2867_s30 = int_to_ptr.vmem [resolvable:$false] %s2866_s30 }
  0x5a   : > { %p2862_p11 = scmp.ne.s32.totalorder %s460_s27, %s2861_s15  ;;  %s2868_s12 = scalar_lea.vmem %s2867_s30, 512 }
  0x5b   : > { %p2869_p5 = scmp.lt.s32.totalorder %s460_s27, %s2867_s30  ;;  %p2870_p4 = scmp.lt.s32.totalorder %s2868_s12, %s2861_s15 }
  0x5c   : > { %s458_s5 = scalar_lea.hbm %s3748_s7, %s2461_s17  ;;  %p2864_p0 = pnand %p2862_p11, %p2850_p3 }
  0x5d   : > { %p2871_p12 = por %p2870_p4, %p2869_p5 }
  0x5e   : > { %p2865_p2 = pneg %p2864_p0 }
  0x60   : > { %p2872_p8 = pnand %p2871_p12, %p2865_p2 }
  0x62   : > { %2875 = shalt.err (!%p2872_p8)
}
  0x63   : > { %s3041_s20 = smov 64   ;;  %s3042_s17 = smov 4  }
  0x64   : > { %2644 = dma.hbm_to_vmem [thread:$0]  (!%p3264_p1), %s458_s5, 256, %s460_s27, %s3268_s22, %s3041_s20, %s3041_s20, %s3042_s17  }
  0x65   : > { %s2400_s24 = sshll.u32 %s3028_s25, 4  ;;  %s3749_s8 = sld [smem:[#allocation36_spill]] }
  0x66   : > { %s472_s29 = scalar_lea.vmem [#allocation10], %s3296_s13  ;;  %s470_s30 = scalar_lea.sflag [#allocation11], %s3296_s13 }
  0x67   : > { %s479_s15 = sshll.u32 %s472_s29, 4  ;;  %s3043_s0 = smov [#allocation10]   ;;  %s480_s15 = int_to_ptr.vmem [resolvable:$true] %s479_s15 }
  0x68   : > { %s2889_s12 = scalar_lea.vmem %s480_s15, 16  ;;  %s2894_s7 = sshll.u32 %s3043_s0, 4  ;;  %s2895_s7 = int_to_ptr.vmem [resolvable:$false] %s2894_s7 }
  0x69   : > { %p2890_p6 = scmp.ne.s32.totalorder %s480_s15, %s2889_s12  ;;  %s2896_s26 = scalar_lea.vmem %s2895_s7, 32 }
  0x6a   : > { %p2897_p2 = scmp.lt.s32.totalorder %s480_s15, %s2895_s7  ;;  %p2898_p5 = scmp.lt.s32.totalorder %s2896_s26, %s2889_s12 }
  0x6b   : > { %s477_s1 = scalar_lea.hbm %s3749_s8, %s2400_s24  ;;  %p2892_p11 = pnand %p2890_p6, %p2850_p3 }
  0x6c   : > { %p2899_p4 = por %p2898_p5, %p2897_p2 }
  0x6d   : > { %p2893_p0 = pneg %p2892_p11 }
  0x6f   : > { %p2900_p12 = pnand %p2899_p4, %p2893_p0 }
  0x71   : > { %2903 = shalt.err (!%p2900_p12)
}
  0x72   : > { %2647 = dma.hbm_to_vmem [thread:$0]  (!%p3264_p1), %s477_s1, 16, %s480_s15, %s470_s30  }
  0x73   : > { %496 = sbr.rel (%p3280_p9) target bundleno = 2870 (0xb36), region = 64  ;;  %s3325_s22 = sand.u32 (!%p3280_p9), 1, %s3012_s21  }
  0x74   : > { %s499_s0 = scalar_lea.sflag (!%p3280_p9), [#allocation5], %s3325_s22  ;;  %p3750_p3 = scmp.ne.s32.totalorder (!%p3280_p9), %s3733_s11, 0 }
  0x78   : > { %2975 = dma.done.wait (%p3750_p3), %s499_s0, 16  }
  0x79   : > { %2977 = vsyncadd (%p3750_p3), %s499_s0, 4294967280  ;;  %s506_s7 = sand.u32 1, %s3169_s28   ;;  %s2402_s26 = sshll.u32 %s3325_s22, 3 }
  0x7a   : > { %s507_s14 = scalar_lea.sflag [#allocation8], %s506_s7  ;;  %s510_s9 = scalar_lea.vmem [#allocation7], %s2402_s26 }
  0x7b   : > { %2979 = dma.done.wait (%p3750_p3), %s507_s14, 128  }
  0x7c   : > { %2981 = vsyncadd (%p3750_p3), %s507_s14, 4294967168  ;;  %s3340_s5 = sand.u32 1, %s3000_s18  }
  0x7d   : > { %s2403_s27 = sshll.u32 %s3340_s5, 4 }
  0x7e   : > { %s3343_s20 = scalar_lea.vmem [#allocation9], %s2403_s27 }
  0x7f   : > { %2983 = dma.done.wait (%p3227_p13), %s507_s14, 256  }
  0x80   : > { %2985 = vsyncadd (%p3227_p13), %s507_s14, 4294967040  ;;  %s525_s28 = scalar_lea.sflag [#allocation11], %s3340_s5 }
  0x81   : > { %2987 = dma.done.wait (%p3227_p13), %s525_s28, 16  }
  0x82   : > { %2989 = vsyncadd (%p3227_p13), %s525_s28, 4294967280  ;;  %p609_p1 = scmp.lt.s32.totalorder %s3020_s23, 1  ;;  %s3751_s2 = sld [smem:[#allocation31_spill]] }
  0x83   : > { %s3752_s3 = sld [smem:[#allocation32_spill]]  ;;  %p2417_p13 = scmp.ne.s32.totalorder %s3020_s23, 0 }
  0x84   : > { %s610_s11 = scalar_select %p609_p1, %s3020_s23, 1 }
  0x85   : > { %s3753_s28 = sld [smem:[#allocation33_spill]]  ;;  %s3756_s0 = scalar_lea.vmem (!%p2417_p13), [#allocation4], %s3325_s22 }
  0x86   : > { %s2462_s24 = sshll.u32 %s610_s11, 4  ;;  %s2467_s16 = sshll.u32 %s610_s11, 5 }
  0x87   : > { %s3370_s6 = scalar_lea.vmem %s3693_s4, %s2462_s24  ;;  %s3754_s10 = sld [smem:[#allocation34_spill]] }
  0x88   : > { %s3360_s29 = scalar_lea.vmem %s3751_s2, %s2462_s24  ;;  %s3755_s15 = sld [smem:[#allocation37_spill]] }
  0x89   : > { %s3365_s12 = scalar_lea.vmem %s3752_s3, %s2462_s24  ;;  %s3387_s3 = scalar_lea.vmem [#allocation12], %s2402_s26 }
  0x8a   : > { %643 = sbr.rel (%p2417_p13) target bundleno = 147 (0x93), region = 84 }
  0x8b   : > { %s3375_s17 = scalar_lea.vmem %s3753_s28, %s2462_s24 }
  0x8d   : > { %s3380_s1 = scalar_lea.vmem %s3754_s10, %s2462_s24 }
  0x8e   : > { %s3385_s30 = scalar_lea.vmem %s3755_s15, %s2467_s16 }
  0x8f   : > { %v644_v0 = vld [vmem:[%s510_s9] sm:$0xff]  ;;  %vm645_vm0 = vcmask 261120   ;;  %v647_v1 = vld [vmem:[%s3756_s0] sm:$0x1]  ;;  %vm650_vm1 = vcmask 57344   ;;  %v3044_v2 = vmov 0.0  }
  0x90   : > { %646 = vst.msk [vmem:[#allocation2] sm:$0xff] %vm645_vm0, %v644_v0  ;;  %vm648_vm2 = vcmp.eq.s32.totalorder %v647_v1, 0 }
  0x91   : > { %v649_v3 = vsel %vm648_vm2, -1e+18, %v3044_v2 }
  0x92   : > { %651 = vst.msk [vmem:[#allocation3] sm:$0x1] %vm650_vm1, %v649_v3 }
  0x93 PF: > { %vm660_vm3 = vcmask 261120   ;;  %v2752_v11 = vld [vmem:[%s3365_s12 + $0x8] sm:$0xff]   ;;  %v3045_v13 = vmov 0.0   ;;  %v2754_v14 = vld [vmem:[%s3365_s12] sm:$0xff]   ;;  %vm3046_vm4 = vmmov 0   ;;  %v682_v24 = vlaneseq  ;;  %s3047_s2 = smov 104  }
  0x94   : > { %v2753_v12 = vld [vmem:[%s3375_s17 + $0x8] sm:$0xff]   ;;  %2509 = vmatprep.subr.bf16.mxu1 %v3045_v13  ;;  %2525 = vmatprep.subr.bf16.mxu0 %v3045_v13  ;;  %v2755_v15 = vld [vmem:[%s3375_s17] sm:$0xff]   ;;  %s3048_s8 = smov 120   ;;  %s3049_s13 = smov 112   ;;  %v3050_v56 = vmov 1983009808  }
  0x95   : > { %2510 = vmatpush3.bf16.msra.mxu1 %v2752_v11  ;;  %2526 = vmatpush3.bf16.msra.mxu0 %v2753_v12  ;;  %v3412_v25 = vshrl.u32 %v682_v24, 7  ;;  %v3416_v27 = vld [vmem:[%s3360_s29] sm:$0xff]  ;;  %v2756_v35 = vld [vmem:[%s3370_s6 + $0x8] sm:$0xff]   ;;  %v889_v57 = vunpack.c.l.s4 %v3050_v56  ;;  %v3051_v58 = vmov 1934713408   ;;  %vm1332_vm7 = vcmask 64512  }
  0x96   : > { %2511 = vmatprep.subr.bf16.mxu1 %v3045_v13  ;;  %2527 = vmatprep.subr.bf16.mxu0 %v3045_v13  ;;  %v2757_v37 = vld [vmem:[%s3370_s6] sm:$0xff]   ;;  %v921_v59 = vunpack.c.l.s4 %v3051_v58  ;;  %vm1568_vm8 = vcmask 1043456   ;;  %s3757_s26 = scalar_lea.vmem [#allocation10], %s3340_s5  ;;  %vm2081_vm11 = vcmask 523264   ;;  %p2456_p9 = scmp.ne.s32.totalorder %s3020_s23, 1 }
  0x97   : > { %v3392_v4 = vld [vmem:[#allocation2] sm:$0xff]  ;;  %2513 = vmatprep.mubr.msk.bf16.mxu1 %vm3046_vm4, %v3045_v13  ;;  %2529 = vmatprep.mubr.msk.bf16.mxu0 %vm3046_vm4, %v3045_v13  ;;  %v684_v26 = vsub.s32 0, %v3412_v25  ;;  %v689_v28 = vsub.s32 1, %v3412_v25  ;;  %v762_v40 = vsub.s32 3, %v3412_v25  ;;  %v699_v49 = vsub.s32 2, %v3412_v25  ;;  %s3758_s5 = sld [smem:[#allocation38_spill]] (!%p2456_p9) }
  0x98   : > { %v661_v5 = vsel %vm660_vm3, %v3392_v4, 0.0  ;;  %v890_v60 = vunpack.c.0.s8 %v889_v57  ;;  %v922_v63 = vunpack.c.0.s8 %v921_v59 }
  0x99   : > { %662 = vadd.xlane.f32.xlu0 %v661_v5  ;;  %2512 = vmatpush3.bf16.msra.mxu1 %v2754_v14  ;;  %v685_v29 = vrot.slane %v3416_v27, %v684_v26  ;;  %v690_v32 = vrot.slane %v3416_v27, %v689_v28  ;;  %v763_v45 = vrot.slane %v3416_v27, %v762_v40 }
  0x9a   : > { %2528 = vmatpush3.bf16.msra.mxu0 %v2755_v15  ;;  %2517 = vmatprep.subr.bf16.mxu1 %v3045_v13  ;;  %v700_v53 = vrot.slane %v3416_v27, %v699_v49  ;;  %v3451_v0 = vsub.s32 %v890_v60, %v3412_v25 }
  0x9b   : > { %2539 = vmatprep.subr.bf16.mxu0 %v3045_v13 }
 0x122   : > { %v663_v6 = vpop.xlane.xlu0 %662 }
 0x123   : > { %v665_v7 = vmul.f32 0.03125, %v663_v6 }
 0x125   : > { %v666_v8 = vsub.f32 %v3392_v4, %v665_v7  ;;  %v3454_v7 = vsub.s32 %v922_v63, %v3412_v25 }
 0x127   : > { %v667_v9 = vmul.f32 %v666_v8, %v666_v8 }
 0x129   : > { %v668_v10 = vsel %vm660_vm3, %v667_v9, 0.0 }
 0x12a   : > { %669 = vadd.xlane.f32.xlu0 %v668_v10 }
 0x1b3   : > { %v670_v16 = vpop.xlane.xlu0 %669 }
 0x1b4   : > { %v671_v17 = vmul.f32 0.032258064, %v670_v16 }
 0x1b6   : > { %2764 = vrsqrt.f32 %v671_v17  ;;  %vm674_vm5 = vcmp.eq.f32.partialorder %v671_v17, inf  ;;  %v677_v20 = vand.u32 2147483648, %v671_v17  ;;  %vm676_vm6 = vcmp.eq.f32.partialorder %v671_v17, 0.0 }
 0x1c3   : > { %v2765_v18 = vpop.eup %2764 }
 0x1c4   : > { %v673_v19 = vmul.f32 %v2765_v18, %v671_v17 }
 0x1c6   : > { %v675_v21 = vsel %vm674_vm5, %v671_v17, %v673_v19 }
 0x1c7   : > { %v678_v22 = vsel %vm676_vm6, %v677_v20, %v675_v21 }
 0x1c8   : > { %v679_v23 = vadd.f32 1e-06, %v678_v22 }
 0x1ca   : > { %2766 = vrcp.f32 %v679_v23 }
 0x1d7   : > { %v2767_v30 = vpop.eup %2766 }
 0x1d8   : > { %v681_v31 = vmul.f32 %v2767_v30, %v666_v8 }
 0x1da   : > { %v686_v33 = vmul.f32 %v685_v29, %v681_v31 }
 0x1dc   : > { %v691_v34 = vadd.f32 %v690_v32, %v686_v33 }
 0x1de   : > { %v692_v36 = vpack.c.bf16 %v691_v34, %v691_v34 }
 0x1e0   : > { %2514 = vmatmul.mubr.msk.bf16.vlgmr.msra.gmra.mxu1 %vm660_vm3, %v692_v36  ;;  %2530 = vmatmul.mubr.msk.bf16.vlgmr.msra.gmra.mxu0 %vm660_vm3, %v692_v36 }
 0x1e1   : > { %2518 = vmatpush3.bf16.msra.mxu1 %v2756_v35  ;;  %2521 = vmatprep.mubr.msk.bf16.mxu1 %vm3046_vm4, %v3045_v13 }
 0x1e2   : > { %2519 = vmatprep.subr.bf16.mxu1 %v3045_v13  ;;  %2541 = vmatprep.mubr.msk.bf16.mxu0 %vm3046_vm4, %v3045_v13 }
 0x1e5   : > { %2520 = vmatpush3.bf16.msra.mxu1 %v2757_v37 }
 0x1e6   : > { %2533 = vmatprep.subr.bf16.mxu1 %v3045_v13 }
 0x1e8   : > { %2522 = vmatmul.mubr.msk.bf16.vlgmr.msra.gmra.mxu1 %vm660_vm3, %v692_v36 }
 0x1e9   : > { %2535 = vmatprep.mubr.msk.bf16.mxu1 %vm3046_vm4, %v3045_v13 }
 0x2a0   : > { %v750_v38 = vpop.f32.mrf.mxu1  ;;  %v3438_v39 = vpop.f32.mrf.mxu0 }
 0x2a1   : > { %v751_v55 = vadd.f32 %v750_v38, %v700_v53 }
 0x2a2   : > { %v2515_v41 = vpop.f32.mrf.mxu1  ;;  %v2531_v42 = vpop.f32.mrf.mxu0 }
 0x2a4   : > { %v753_v43 = vpop.f32.mrf.mxu1  ;;  %v873_v44 = vpop.f32.mrf.mxu0 }
 0x2a6   : > { %v2516_v46 = vpop.f32.mrf.mxu1  ;;  %v2532_v47 = vpop.f32.mrf.mxu0 }
 0x2a8   : > { %v810_v48 = vpop.f32.mrf.mxu1 }
 0x2a9   : > { %v811_v50 = vadd.f32 %v810_v48, %v763_v45 }
 0x2aa   : > { %v2523_v51 = vpop.f32.mrf.mxu1 }
 0x2ab   : > { %1033 = vrot.lane.b32.xlu0 %v811_v50, %s3047_s2  ;;  %1027 = vrot.lane.b32.xlu1 %v811_v50, %s3048_s8 }
 0x2ac   : > { %v813_v52 = vpop.f32.mrf.mxu1 }
 0x2ae   : > { %v2524_v54 = vpop.f32.mrf.mxu1 }
 0x2af   : > { %1030 = vrot.lane.b32.xlu1 %v811_v50, %s3049_s13 }
 0x2b3   : > { %877 = vrot.lane.b32.xlu1 %v751_v55, %s3048_s8 }
 0x2b7   : > { %880 = vrot.lane.b32.xlu1 %v751_v55, %s3049_s13 }
 0x2bb   : > { %883 = vrot.lane.b32.xlu1 %v751_v55, %s3047_s2 }
 0x31d   : > { %v1034_v61 = vpop.permute.xlu0 %1033  ;;  %v1028_v62 = vpop.permute.xlu1 %1027 }
 0x31e   : > { %v1052_v1 = vcombine.low %v1028_v62, %v1034_v61  ;;  %v1053_v2 = vcombine.high %v1028_v62, %v1034_v61 }
 0x320   : > { %v1060_v8 = vrot.slane %v1052_v1, %v3451_v0  ;;  %v1067_v9 = vrot.slane %v1053_v2, %v3451_v0 }
 0x321   : > { %v1031_v3 = vpop.permute.xlu1 %1030 }
 0x322   : > { %v1036_v5 = vcombine.low %v811_v50, %v1031_v3  ;;  %v1037_v6 = vcombine.high %v811_v50, %v1031_v3 }
 0x324   : > { %v1044_v10 = vrot.slane %v1036_v5, %v3451_v0  ;;  %v1051_v11 = vrot.slane %v1037_v6, %v3451_v0 }
 0x325   : > { %v878_v12 = vpop.permute.xlu1 %877 }
 0x326   : > { %v1068_v14 = vcombine.low %v1044_v10, %v1060_v8  ;;  %v1069_v15 = vcombine.high %v1044_v10, %v1060_v8  ;;  %v1084_v16 = vcombine.low %v1051_v11, %v1067_v9  ;;  %v1085_v17 = vcombine.high %v1051_v11, %v1067_v9 }
 0x328   : > { %v1076_v18 = vrot.slane %v1068_v14, %v3454_v7  ;;  %v1083_v19 = vrot.slane %v1069_v15, %v3454_v7  ;;  %v1092_v20 = vrot.slane %v1084_v16, %v3454_v7  ;;  %v1099_v21 = vrot.slane %v1085_v17, %v3454_v7 }
 0x329   : > { %v881_v22 = vpop.permute.xlu1 %880 }
 0x32a   : > { %v1104_v23 = vcombine.low %v1076_v18, %v1083_v19  ;;  %v2429_v24 = vcombine.high %v1076_v18, %v1083_v19  ;;  %v1120_v29 = vcombine.low %v1092_v20, %v1099_v21  ;;  %v2430_v30 = vcombine.high %v1092_v20, %v1099_v21 }
 0x32b   : > { %v886_v31 = vcombine.low %v751_v55, %v881_v22  ;;  %v887_v32 = vcombine.high %v751_v55, %v881_v22 }
 0x32c   : > { %v1111_v33 = vrot.slane %v1104_v23, %v3451_v0  ;;  %v1119_v34 = vrot.slane %v2429_v24, %v3451_v0  ;;  %v1127_v35 = vrot.slane %v1120_v29, %v3451_v0  ;;  %v1135_v36 = vrot.slane %v2430_v30, %v3451_v0 }
 0x32d   : > { %v884_v37 = vpop.permute.xlu1 %883  ;;  %v894_v43 = vrot.slane %v886_v31, %v3451_v0  ;;  %v901_v44 = vrot.slane %v887_v32, %v3451_v0 }
 0x32e   : > { %v902_v38 = vcombine.low %v878_v12, %v884_v37  ;;  %v903_v40 = vcombine.high %v878_v12, %v884_v37  ;;  %v1136_v41 = vcombine.low %v1111_v33, %v1119_v34  ;;  %v1152_v42 = vcombine.low %v1127_v35, %v1135_v36 }
 0x32f   : > { %v1137_v49 = vcombine.high %v1111_v33, %v1119_v34  ;;  %v1153_v50 = vcombine.high %v1127_v35, %v1135_v36 }
 0x330   : > { %v910_v45 = vrot.slane %v902_v38, %v3451_v0  ;;  %v917_v46 = vrot.slane %v903_v40, %v3451_v0  ;;  %v1144_v47 = vrot.slane %v1136_v41, %v3454_v7  ;;  %v1160_v48 = vrot.slane %v1152_v42, %v3454_v7  ;;  %v2433_v42 = vld [vmem:[#allocation3] ss:$0 sm:$0xff] }
 0x331   : > { %v1151_v63 = vrot.slane %v1137_v49, %v3454_v7  ;;  %v1167_v1 = vrot.slane %v1153_v50, %v3454_v7 }
 0x332   : > { %v918_v51 = vcombine.low %v894_v43, %v910_v45  ;;  %v919_v52 = vcombine.high %v894_v43, %v910_v45  ;;  %v934_v53 = vcombine.low %v901_v44, %v917_v46  ;;  %v935_v54 = vcombine.high %v901_v44, %v917_v46 }
 0x333   : > { %v1168_v55 = vcombine.low %v1144_v47, %v1160_v48  ;;  %v1169_v56 = vcombine.high %v1144_v47, %v1160_v48  ;;  %v1170_v17 = vcombine.low %v1151_v63, %v1167_v1  ;;  %v1171_v18 = vcombine.high %v1151_v63, %v1167_v1 }
 0x334   : > { %v926_v57 = vrot.slane %v918_v51, %v3454_v7  ;;  %v933_v58 = vrot.slane %v919_v52, %v3454_v7  ;;  %v942_v59 = vrot.slane %v934_v53, %v3454_v7  ;;  %v949_v60 = vrot.slane %v935_v54, %v3454_v7 }
 0x335   : > { %v1172_v61 = vpack.c.bf16 %v1168_v55, %v1168_v55  ;;  %v1173_v62 = vpack.c.bf16 %v1169_v56, %v1169_v56  ;;  %v1174_v29 = vpack.c.bf16 %v1170_v17, %v1170_v17  ;;  %v1175_v30 = vpack.c.bf16 %v1171_v18, %v1171_v18 }
 0x336   : > { %v954_v2 = vcombine.low %v926_v57, %v933_v58  ;;  %v2427_v3 = vcombine.high %v926_v57, %v933_v58  ;;  %v970_v5 = vcombine.low %v942_v59, %v949_v60  ;;  %v2428_v6 = vcombine.high %v942_v59, %v949_v60 }
 0x337   : > { %v1337_v8 = vsel %vm1332_vm7, %v1172_v61, 0  ;;  %v1383_v9 = vsel %vm1332_vm7, %v1173_v62, 0  ;;  %v1429_v35 = vsel %vm1332_vm7, %v1174_v29, 0  ;;  %v1475_v36 = vsel %vm1332_vm7, %v1175_v30, 0 }
 0x338   : > { %v961_v10 = vrot.slane %v954_v2, %v3451_v0  ;;  %v969_v11 = vrot.slane %v2427_v3, %v3451_v0  ;;  %v977_v12 = vrot.slane %v970_v5, %v3451_v0  ;;  %v985_v14 = vrot.slane %v2428_v6, %v3451_v0  ;;  %2534 = vmatpush3.bf16.xpose.msra.mxu1 %v1337_v8 }
 0x339   : > { %2540 = vmatpush3.bf16.xpose.msra.mxu0 %v1383_v9  ;;  %2545 = vmatprep.subr.bf16.mxu1 %v3045_v13  ;;  %v822_v5 = vsub.s32 4, %v3412_v25 }
 0x33a   : > { %v986_v15 = vcombine.low %v961_v10, %v969_v11  ;;  %v1002_v16 = vcombine.low %v977_v12, %v985_v14  ;;  %2551 = vmatprep.subr.bf16.mxu0 %v3045_v13  ;;  %v987_v19 = vcombine.high %v961_v10, %v969_v11  ;;  %v1003_v20 = vcombine.high %v977_v12, %v985_v14 }
 0x33b   : > { %v823_v6 = vrot.slane %v3416_v27, %v822_v5 }
 0x33c   : > { %v994_v21 = vrot.slane %v986_v15, %v3454_v7  ;;  %v1010_v22 = vrot.slane %v1002_v16, %v3454_v7  ;;  %v1001_v33 = vrot.slane %v987_v19, %v3454_v7  ;;  %v1017_v34 = vrot.slane %v1003_v20, %v3454_v7 }
 0x33d   : > { %v871_v8 = vadd.f32 %v3438_v39, %v823_v6 }
 0x33e   : > { %v1018_v23 = vcombine.low %v994_v21, %v1010_v22  ;;  %v1019_v24 = vcombine.high %v994_v21, %v1010_v22  ;;  %v1020_v37 = vcombine.low %v1001_v33, %v1017_v34  ;;  %v1021_v38 = vcombine.high %v1001_v33, %v1017_v34 }
 0x340   : > { %v1022_v31 = vpack.c.bf16 %v1018_v23, %v1018_v23  ;;  %v1023_v32 = vpack.c.bf16 %v1019_v24, %v1019_v24  ;;  %v1024_v40 = vpack.c.bf16 %v1020_v37, %v1020_v37  ;;  %v1025_v41 = vpack.c.bf16 %v1021_v38, %v1021_v38 }
 0x342   : > { %2536 = vmatmul.mubr.msk.bf16.vlgmr.msra.gmra.mxu1 %vm1332_vm7, %v1022_v31  ;;  %2542 = vmatmul.mubr.msk.bf16.vlgmr.msra.gmra.mxu0 %vm1332_vm7, %v1023_v32 }
 0x343   : > { %2546 = vmatpush3.bf16.xpose.msra.mxu1 %v1429_v35  ;;  %2552 = vmatpush3.bf16.xpose.msra.mxu0 %v1475_v36 }
 0x344   : > { %2547 = vmatprep.mubr.msk.bf16.mxu1 %vm3046_vm4, %v3045_v13  ;;  %2553 = vmatprep.mubr.msk.bf16.mxu0 %vm3046_vm4, %v3045_v13 }
 0x345   : > { %2557 = vmatprep.subr.bf16.mxu1 %v3045_v13  ;;  %2563 = vmatprep.subr.bf16.mxu0 %v3045_v13 }
 0x34a   : > { %2548 = vmatmul.mubr.msk.bf16.vlgmr.msra.gmra.mxu1 %vm1332_vm7, %v1024_v40  ;;  %2554 = vmatmul.mubr.msk.bf16.vlgmr.msra.gmra.mxu0 %vm1332_vm7, %v1025_v41 }
 0x34b   : > { %2559 = vmatprep.mubr.msk.bf16.mxu1 %vm3046_vm4, %v3045_v13  ;;  %2565 = vmatprep.mubr.msk.bf16.mxu0 %vm3046_vm4, %v3045_v13 }
 0x402   : > { %v1373_v43 = vpop.f32.mrf.mxu1  ;;  %v1419_v44 = vpop.f32.mrf.mxu0 }
 0x403   : > { %v1374_v45 = vadd.f32 %v2433_v42, %v1373_v43  ;;  %v1420_v46 = vadd.f32 %v2433_v42, %v1419_v44 }
 0x404   : > { %v2537_v47 = vpop.f32.mrf.mxu1  ;;  %v2543_v48 = vpop.f32.mrf.mxu0 }
 0x405   : > { %v1520_v49 = vsel %vm1332_vm7, %v1420_v46, -inf  ;;  %v1517_v50 = vsel %vm1332_vm7, %v1374_v45, -inf }
 0x406   : > { %1521 = vmax.xlane.f32.xlu0 %v1520_v49  ;;  %v1422_v51 = vpop.f32.mrf.mxu0  ;;  %1518 = vmax.xlane.f32.xlu1 %v1517_v50  ;;  %v1376_v52 = vpop.f32.mrf.mxu1 }
 0x408   : > { %v2538_v53 = vpop.f32.mrf.mxu1  ;;  %v2544_v54 = vpop.f32.mrf.mxu0 }
 0x40a   : > { %v1465_v55 = vpop.f32.mrf.mxu1  ;;  %v1511_v56 = vpop.f32.mrf.mxu0 }
 0x40b   : > { %v1466_v57 = vadd.f32 %v2433_v42, %v1465_v55  ;;  %v1512_v60 = vadd.f32 %v2433_v42, %v1511_v56 }
 0x40c   : > { %v2549_v58 = vpop.f32.mrf.mxu1  ;;  %v2555_v59 = vpop.f32.mrf.mxu0 }
 0x40d   : > { %v1523_v61 = vsel %vm1332_vm7, %v1466_v57, -inf  ;;  %v1526_v3 = vsel %vm1332_vm7, %v1512_v60, -inf }
 0x40e   : > { %v1514_v62 = vpop.f32.mrf.mxu0  ;;  %1524 = vmax.xlane.f32.xlu1 %v1523_v61  ;;  %v1468_v63 = vpop.f32.mrf.mxu1 }
 0x410   : > { %v2550_v1 = vpop.f32.mrf.mxu1  ;;  %v2556_v2 = vpop.f32.mrf.mxu0 }
 0x412   : > { %1527 = vmax.xlane.f32.xlu1 %v1526_v3 }
 0x423   : > { %1180 = vrot.lane.b32.xlu1 %v871_v8, %s3049_s13 }
 0x48f   : > { %v1522_v9 = vpop.xlane.xlu0 %1521  ;;  %v1519_v10 = vpop.xlane.xlu1 %1518 }
 0x490   : > { %v1530_v11 = vsub.f32 %v1420_v46, %v1522_v9  ;;  %v1529_v12 = vsub.f32 %v1374_v45, %v1519_v10 }
 0x492   : > { %v1535_v14 = vmul.f32 1.442695, %v1530_v11  ;;  %v1533_v15 = vmul.f32 1.442695, %v1529_v12 }
 0x494   : > { %2768 = vpow2.f32 %v1535_v14 }
 0x495   : > { %2770 = vpow2.f32 %v1533_v15 }
 0x497   : > { %v1525_v19 = vpop.xlane.xlu1 %1524 }
 0x498   : > { %v1531_v22 = vsub.f32 %v1466_v57, %v1525_v19 }
 0x49a   : > { %v1537_v24 = vmul.f32 1.442695, %v1531_v22 }
 0x49b   : > { %v1528_v20 = vpop.xlane.xlu1 %1527 }
 0x49c   : > { %v1532_v21 = vsub.f32 %v1512_v60, %v1528_v20 }
 0x49e   : > { %v1539_v23 = vmul.f32 1.442695, %v1532_v21 }
 0x49f   : > { %v1181_v33 = vpop.permute.xlu1 %1180 }
 0x4a0   : > { %2772 = vpow2.f32 %v1539_v23  ;;  %v1186_v36 = vcombine.low %v871_v8, %v1181_v33  ;;  %v1187_v37 = vcombine.high %v871_v8, %v1181_v33 }
 0x4a1   : > { %v3516_v16 = vpop.eup %2768  ;;  %2774 = vpow2.f32 %v1537_v24 }
 0x4a2   : > { %v3518_v17 = vpop.eup %2770  ;;  %v1544_v18 = vsel %vm1332_vm7, %v3516_v16, 0.0  ;;  %v1194_v43 = vrot.slane %v1186_v36, %v3451_v0  ;;  %v1201_v44 = vrot.slane %v1187_v37, %v3451_v0 }
 0x4a3   : > { %v1541_v39 = vsel %vm1332_vm7, %v3518_v17, 0.0  ;;  %1545 = vadd.xlane.f32.xlu1 %v1544_v18 }
 0x4a4   : > { %1542 = vadd.xlane.f32.xlu0 %v1541_v39 }
 0x4ad   : > { %v3526_v29 = vpop.eup %2772 }
 0x4ae   : > { %v3528_v30 = vpop.eup %2774  ;;  %v1550_v31 = vsel %vm1332_vm7, %v3526_v29, 0.0 }
 0x4af   : > { %v1547_v32 = vsel %vm1332_vm7, %v3528_v30, 0.0 }
 0x4b4   : > { %1183 = vrot.lane.b32.xlu1 %v871_v8, %s3047_s2 }
 0x4ba   : > { %1177 = vrot.lane.b32.xlu0 %v871_v8, %s3048_s8 }
 0x4d8   : > { %1551 = vadd.xlane.f32.xlu1 %v1550_v31 }
 0x4d9   : > { %1548 = vadd.xlane.f32.xlu0 %v1547_v32 }
 0x52c   : > { %v1546_v34 = vpop.xlane.xlu1 %1545 }
 0x52d   : > { %v1543_v35 = vpop.xlane.xlu0 %1542  ;;  %2776 = vrcp.f32 %v1546_v34 }
 0x52e   : > { %2778 = vrcp.f32 %v1543_v35 }
 0x530   : > { %v1184_v38 = vpop.permute.xlu1 %1183 }
 0x531   : > { %v1178_v40 = vpop.permute.xlu0 %1177 }
 0x532   : > { %v1202_v41 = vcombine.low %v1178_v40, %v1184_v38  ;;  %v1203_v42 = vcombine.high %v1178_v40, %v1184_v38 }
 0x534   : > { %v1210_v45 = vrot.slane %v1202_v41, %v3451_v0  ;;  %v1217_v46 = vrot.slane %v1203_v42, %v3451_v0  ;;  %v657_v41 = vld [vmem:[%s3380_s1 + $0x4] sm:$0xf]  ;;  %v656_v42 = vld [vmem:[%s3380_s1] sm:$0xf] }
 0x536   : > { %v1218_v47 = vcombine.low %v1194_v43, %v1210_v45  ;;  %v1219_v48 = vcombine.high %v1194_v43, %v1210_v45  ;;  %v1234_v49 = vcombine.low %v1201_v44, %v1217_v46  ;;  %v1235_v50 = vcombine.high %v1201_v44, %v1217_v46  ;;  %v659_v44 = vld [vmem:[%s3380_s1 + $0xc] sm:$0xf] }
 0x537   : > { %v1802_v43 = vsel %vm1568_vm8, %v656_v42, 0  ;;  %v2760_v42 = vld [vmem:[%s3385_s30 + $0x18] sm:$0xff]  }
 0x538   : > { %v1226_v51 = vrot.slane %v1218_v47, %v3454_v7  ;;  %v1233_v52 = vrot.slane %v1219_v48, %v3454_v7  ;;  %v1242_v53 = vrot.slane %v1234_v49, %v3454_v7  ;;  %v1249_v54 = vrot.slane %v1235_v50, %v3454_v7 }
 0x539   : > { %v1897_v50 = vsel %vm1568_vm8, %v659_v44, 0 }
 0x53a   : > { %v1254_v55 = vcombine.low %v1226_v51, %v1233_v52  ;;  %v2431_v56 = vcombine.high %v1226_v51, %v1233_v52  ;;  %v1270_v57 = vcombine.low %v1242_v53, %v1249_v54  ;;  %v2432_v58 = vcombine.high %v1242_v53, %v1249_v54  ;;  %v2777_v5 = vpop.eup %2776 }
 0x53b   : > { %v2779_v11 = vpop.eup %2778  ;;  %v1558_v20 = vmul.f32 %v2777_v5, %v3516_v16 }
 0x53c   : > { %v1261_v59 = vrot.slane %v1254_v55, %v3451_v0  ;;  %v1269_v60 = vrot.slane %v2431_v56, %v3451_v0  ;;  %v1277_v61 = vrot.slane %v1270_v57, %v3451_v0  ;;  %v1285_v62 = vrot.slane %v2432_v58, %v3451_v0 }
 0x53d   : > { %v1557_v19 = vmul.f32 %v2779_v11, %v3518_v17  ;;  %v1562_v31 = vpack.c.bf16 %v1558_v20, %v1558_v20 }
 0x53e   : > { %v1286_v63 = vcombine.low %v1261_v59, %v1269_v60  ;;  %v1302_v1 = vcombine.low %v1277_v61, %v1285_v62  ;;  %v1287_v2 = vcombine.high %v1261_v59, %v1269_v60  ;;  %v1303_v3 = vcombine.high %v1277_v61, %v1285_v62 }
 0x540   : > { %v1294_v6 = vrot.slane %v1286_v63, %v3454_v7  ;;  %v1310_v8 = vrot.slane %v1302_v1, %v3454_v7  ;;  %v1301_v9 = vrot.slane %v1287_v2, %v3454_v7  ;;  %v1317_v10 = vrot.slane %v1303_v3, %v3454_v7 }
 0x541   : > { %v1561_v7 = vpack.c.bf16 %v1557_v19, %v1557_v19 }
 0x542   : > { %v1318_v12 = vcombine.low %v1294_v6, %v1310_v8  ;;  %v1319_v14 = vcombine.high %v1294_v6, %v1310_v8  ;;  %v1320_v15 = vcombine.low %v1301_v9, %v1317_v10  ;;  %v1321_v18 = vcombine.high %v1301_v9, %v1317_v10 }
 0x544   : > { %v1322_v0 = vpack.c.bf16 %v1318_v12, %v1318_v12  ;;  %v1323_v39 = vpack.c.bf16 %v1319_v14, %v1319_v14  ;;  %v1324_v23 = vpack.c.bf16 %v1320_v15, %v1320_v15  ;;  %v1325_v24 = vpack.c.bf16 %v1321_v18, %v1321_v18 }
 0x545   : > { %v1942_v15 = vsub.s32 5, %v3412_v25 }
 0x546   : > { %v1570_v21 = vsel %vm1568_vm8, %v1322_v0, 0  ;;  %v1616_v22 = vsel %vm1568_vm8, %v1323_v39, 0  ;;  %v1662_v16 = vsel %vm1568_vm8, %v1324_v23, 0  ;;  %v1708_v17 = vsel %vm1568_vm8, %v1325_v24, 0 }
 0x547   : > { %2558 = vmatpush3.bf16.msra.mxu1 %v1570_v21  ;;  %2564 = vmatpush3.bf16.msra.mxu0 %v1616_v22  ;;  %v1943_v20 = vrot.slane %v3416_v27, %v1942_v15 }
 0x548   : > { %2569 = vmatprep.subr.bf16.mxu1 %v3045_v13  ;;  %2575 = vmatprep.subr.bf16.mxu0 %v3045_v13 }
 0x54a   : > { %2560 = vmatmul.mubr.msk.bf16.vlgmr.msra.gmra.mxu1 %vm1332_vm7, %v1561_v7  ;;  %2566 = vmatmul.mubr.msk.bf16.vlgmr.msra.gmra.mxu0 %vm1332_vm7, %v1562_v31 }
 0x54b   : > { %2570 = vmatpush3.bf16.msra.mxu1 %v1662_v16  ;;  %2576 = vmatpush3.bf16.msra.mxu0 %v1708_v17 }
 0x54c   : > { %2571 = vmatprep.mubr.msk.bf16.mxu1 %vm3046_vm4, %v3045_v13  ;;  %2577 = vmatprep.mubr.msk.bf16.mxu0 %vm3046_vm4, %v3045_v13 }
 0x54d   : > { %2581 = vmatprep.subr.bf16.mxu1 %v3045_v13  ;;  %2587 = vmatprep.subr.bf16.mxu0 %v3045_v13 }
 0x561   : > { %v1552_v32 = vpop.xlane.xlu1 %1551 }
 0x562   : > { %v1549_v33 = vpop.xlane.xlu0 %1548  ;;  %2780 = vrcp.f32 %v1552_v32 }
 0x563   : > { %2782 = vrcp.f32 %v1549_v33 }
 0x56f   : > { %v2781_v34 = vpop.eup %2780 }
 0x570   : > { %v2783_v35 = vpop.eup %2782  ;;  %v1560_v36 = vmul.f32 %v2781_v34, %v3526_v29  ;;  %v1756_v29 = vsel %vm1568_vm8, %v657_v41, 0  ;;  %v2759_v41 = vld [vmem:[%s3343_s20] sm:$0xff]  }
 0x571   : > { %v1559_v37 = vmul.f32 %v2783_v35, %v3528_v30  ;;  %v658_v30 = vld [vmem:[%s3380_s1 + $0x8] sm:$0xf] }
 0x572   : > { %v1564_v38 = vpack.c.bf16 %v1560_v36, %v1560_v36  ;;  %v1849_v49 = vsel %vm1568_vm8, %v658_v30, 0 }
 0x573   : > { %v1563_v40 = vpack.c.bf16 %v1559_v37, %v1559_v37 }
 0x574   : > { %2578 = vmatmul.mubr.msk.bf16.vlgmr.msra.gmra.mxu0 %vm1332_vm7, %v1564_v38 }
 0x575   : > { %2572 = vmatmul.mubr.msk.bf16.vlgmr.msra.gmra.mxu1 %vm1332_vm7, %v1563_v40  ;;  %2589 = vmatprep.mubr.msk.bf16.mxu0 %vm3046_vm4, %v3045_v13  ;;  %v2758_v40 = vld [vmem:[%s3343_s20 + $0x8] sm:$0xff]  }
 0x576   : > { %2583 = vmatprep.mubr.msk.bf16.mxu1 %vm3046_vm4, %v3045_v13  ;;  %2582 = vmatpush3.bf16.msra.mxu1 %v1756_v29 }
 0x577   : > { %2588 = vmatpush3.bf16.msra.mxu0 %v1802_v43  ;;  %2593 = vmatprep.subr.bf16.mxu1 %v3045_v13 }
 0x578   : > { %2599 = vmatprep.subr.bf16.mxu0 %v3045_v13 }
 0x60a   : > { %v1606_v45 = vpop.f32.mrf.mxu1  ;;  %v1652_v46 = vpop.f32.mrf.mxu0 }
 0x60b   : > { %v1750_v47 = vpack.c.bf16 %v1606_v45, %v1606_v45  ;;  %v1751_v48 = vpack.c.bf16 %v1652_v46, %v1652_v46 }
 0x60c   : > { %v2561_v51 = vpop.f32.mrf.mxu1  ;;  %v2567_v52 = vpop.f32.mrf.mxu0 }
 0x60d   : > { %2584 = vmatmul.mubr.msk.bf16.vlgmr.msra.gmra.mxu1 %vm1332_vm7, %v1751_v48  ;;  %2590 = vmatmul.mubr.msk.bf16.vlgmr.msra.gmra.mxu0 %vm1332_vm7, %v1750_v47 }
 0x60e   : > { %v1609_v53 = vpop.f32.mrf.mxu1  ;;  %v1655_v54 = vpop.f32.mrf.mxu0  ;;  %2594 = vmatpush3.bf16.msra.mxu1 %v1849_v49  ;;  %2600 = vmatpush3.bf16.msra.mxu0 %v1897_v50  ;;  %v1968_v49 = vsub.s32 6, %v3412_v25  ;;  %v1973_v50 = vsub.s32 7, %v3412_v25 }
 0x60f   : > { %2595 = vmatprep.mubr.msk.bf16.mxu1 %vm3046_vm4, %v3045_v13  ;;  %2601 = vmatprep.mubr.msk.bf16.mxu0 %vm3046_vm4, %v3045_v13 }
 0x610   : > { %v2562_v55 = vpop.f32.mrf.mxu1  ;;  %v2568_v56 = vpop.f32.mrf.mxu0  ;;  %2605 = vmatprep.subr.bf16.mxu1 %v3045_v13  ;;  %2613 = vmatprep.subr.bf16.mxu0 %v3045_v13  ;;  %v1969_v51 = vrot.slane %v3416_v27, %v1968_v49  ;;  %v1974_v54 = vrot.slane %v3416_v27, %v1973_v50 }
 0x634   : > { %v1744_v57 = vpop.f32.mrf.mxu0 }
 0x635   : > { %v1698_v58 = vpop.f32.mrf.mxu1  ;;  %v1892_v59 = vpack.c.bf16 %v1744_v57, %v1744_v57 }
 0x636   : > { %v1844_v60 = vpack.c.bf16 %v1698_v58, %v1698_v58  ;;  %v2579_v61 = vpop.f32.mrf.mxu0  ;;  %v2762_v58 = vld [vmem:[%s3385_s30 + $0x8] sm:$0xff]  }
 0x637   : > { %v2573_v62 = vpop.f32.mrf.mxu1  ;;  %2602 = vmatmul.mubr.msk.bf16.vlgmr.msra.gmra.mxu0 %vm1332_vm7, %v1892_v59  ;;  %v2763_v59 = vld [vmem:[%s3385_s30] sm:$0xff]  }
 0x638   : > { %2596 = vmatmul.mubr.msk.bf16.vlgmr.msra.gmra.mxu1 %vm1332_vm7, %v1844_v60  ;;  %v1747_v63 = vpop.f32.mrf.mxu0  ;;  %2621 = vmatprep.mubr.msk.bf16.mxu0 %vm3046_vm4, %v3045_v13  ;;  %v2446_v60 = vld [vmem:[%s3757_s26] ss:$0 sm:$0xff] }
 0x639   : > { %v1701_v1 = vpop.f32.mrf.mxu1  ;;  %2609 = vmatprep.mubr.msk.bf16.mxu1 %vm3046_vm4, %v3045_v13  ;;  %2606 = vmatpush3.bf16.msra.mxu1 %v2758_v40 }
 0x63a   : > { %v2580_v2 = vpop.f32.mrf.mxu0  ;;  %2607 = vmatprep.subr.bf16.mxu1 %v3045_v13  ;;  %2614 = vmatpush3.bf16.msra.mxu0 %v2760_v42 }
 0x63b   : > { %v2574_v3 = vpop.f32.mrf.mxu1  ;;  %2615 = vmatprep.subr.bf16.mxu0 %v3045_v13 }
 0x63d   : > { %2608 = vmatpush3.bf16.msra.mxu1 %v2759_v41 }
 0x6cd   : > { %v1792_v5 = vpop.f32.mrf.mxu1  ;;  %v1838_v6 = vpop.f32.mrf.mxu0 }
 0x6ce   : > { %v1839_v18 = vadd.f32 %v1838_v6, %v1792_v5  ;;  %v2450_v5 = vld [vmem:[%s3360_s29 + $0x8] ss:$0 sm:$0xff] }
 0x6cf   : > { %v2585_v8 = vpop.f32.mrf.mxu1  ;;  %v2591_v9 = vpop.f32.mrf.mxu0 }
 0x6d1   : > { %v1795_v10 = vpop.f32.mrf.mxu1  ;;  %v1841_v11 = vpop.f32.mrf.mxu0 }
 0x6d3   : > { %v2586_v12 = vpop.f32.mrf.mxu1  ;;  %v2592_v14 = vpop.f32.mrf.mxu0 }
 0x6f7   : > { %v1933_v0 = vpop.f32.mrf.mxu0 }
 0x6f8   : > { %v1885_v39 = vpop.f32.mrf.mxu1 }
 0x6f9   : > { %v1891_v19 = vadd.f32 %v1885_v39, %v1839_v18  ;;  %v2603_v21 = vpop.f32.mrf.mxu0 }
 0x6fa   : > { %v2597_v22 = vpop.f32.mrf.mxu1 }
 0x6fb   : > { %v1939_v23 = vadd.f32 %v1933_v0, %v1891_v19  ;;  %v1936_v24 = vpop.f32.mrf.mxu0 }
 0x6fc   : > { %v1888_v7 = vpop.f32.mrf.mxu1 }
 0x6fd   : > { %v1944_v31 = vadd.f32 %v1943_v20, %v1939_v23  ;;  %v2604_v16 = vpop.f32.mrf.mxu0 }
 0x6fe   : > { %v2598_v17 = vpop.f32.mrf.mxu1 }
 0x6ff   : > { %v1945_v32 = vadd.f32 %v1944_v31, %v3392_v4  ;;  %v2761_v4 = vld [vmem:[%s3385_s30 + $0x10] sm:$0xff]  }
 0x700   : > { %2616 = vmatpush3.bf16.msra.mxu0 %v2761_v4 }
 0x701   : > { %v1946_v33 = vsel %vm660_vm3, %v1945_v32, 0.0  ;;  %2617 = vmatprep.subr.bf16.mxu0 %v3045_v13 }
 0x702   : > { %1947 = vadd.xlane.f32.xlu0 %v1946_v33 }
 0x704   : > { %2618 = vmatpush3.bf16.msra.mxu0 %v2762_v58 }
 0x705   : > { %2619 = vmatprep.subr.bf16.mxu0 %v3045_v13 }
 0x708   : > { %2620 = vmatpush3.bf16.msra.mxu0 %v2763_v59 }
 0x78b   : > { %v1948_v34 = vpop.xlane.xlu0 %1947 }
 0x78c   : > { %v1949_v35 = vmul.f32 0.03125, %v1948_v34 }
 0x78e   : > { %v1950_v36 = vsub.f32 %v1945_v32, %v1949_v35 }
 0x790   : > { %v1951_v37 = vmul.f32 %v1950_v36, %v1950_v36 }
 0x792   : > { %v1952_v38 = vsel %vm660_vm3, %v1951_v37, 0.0 }
 0x793   : > { %1953 = vadd.xlane.f32.xlu0 %v1952_v38 }
 0x81c   : > { %v1954_v29 = vpop.xlane.xlu0 %1953 }
 0x81d   : > { %v1955_v43 = vmul.f32 0.032258064, %v1954_v29 }
 0x81f   : > { %2784 = vrsqrt.f32 %v1955_v43  ;;  %vm1958_vm9 = vcmp.eq.f32.partialorder %v1955_v43, inf  ;;  %v1961_v45 = vand.u32 2147483648, %v1955_v43  ;;  %vm1960_vm10 = vcmp.eq.f32.partialorder %v1955_v43, 0.0 }
 0x82c   : > { %v2785_v30 = vpop.eup %2784 }
 0x82d   : > { %v1957_v44 = vmul.f32 %v2785_v30, %v1955_v43 }
 0x82f   : > { %v1959_v46 = vsel %vm1958_vm9, %v1955_v43, %v1957_v44 }
 0x830   : > { %v1962_v47 = vsel %vm1960_vm10, %v1961_v45, %v1959_v46 }
 0x831   : > { %v1963_v48 = vadd.f32 1e-06, %v1962_v47 }
 0x833   : > { %2786 = vrcp.f32 %v1963_v48 }
 0x840   : > { %v2787_v52 = vpop.eup %2786 }
 0x841   : > { %v1965_v53 = vmul.f32 %v2787_v52, %v1950_v36 }
 0x843   : > { %v1970_v55 = vmul.f32 %v1969_v51, %v1965_v53 }
 0x845   : > { %v1975_v56 = vadd.f32 %v1974_v54, %v1970_v55 }
 0x847   : > { %v1976_v57 = vpack.c.bf16 %v1975_v56, %v1975_v56 }
 0x849   : > { %2610 = vmatmul.mubr.msk.bf16.vlgmr.msra.gmra.mxu1 %vm660_vm3, %v1976_v57 }
 0x909   : > { %v2037_v61 = vpop.f32.mrf.mxu1 }
 0x90a   : > { %v2038_v62 = vadd.f32 %v2446_v60, %v2037_v61 }
 0x90b   : > { %v2611_v63 = vpop.f32.mrf.mxu1 }
 0x90c   : > { %v2043_v1 = vmax.f32 %v2038_v62, 0.0 }
 0x90d   : > { %v2040_v2 = vpop.f32.mrf.mxu1 }
 0x90e   : > { %v2044_v27 = vpack.c.bf16 %v2043_v1, %v2043_v1 }
 0x90f   : > { %v2612_v3 = vpop.f32.mrf.mxu1 }
 0x910   : > { %2622 = vmatmul.mubr.msk.bf16.vlgmr.msra.gmra.mxu0 %vm2081_vm11, %v2044_v27 }
 0x9d0   : > { %v2119_v6 = vpop.f32.mrf.mxu0 }
 0x9d1   : > { %v2120_v8 = vadd.f32 %v2450_v5, %v2119_v6 }
 0x9d2   : > { %v2623_v9 = vpop.f32.mrf.mxu0  ;;  %2130 = sbr.rel (%p2456_p9) target bundleno = 2846 (0xb1e), region = 88 }
 0x9d3   : > { %v2125_v10 = vadd.f32 %v2120_v8, %v1945_v32 }
 0x9d4   : > { %v2122_v11 = vpop.f32.mrf.mxu0 }
 0x9d5   : > { %2126 = vst.msk [vmem:[#allocation2] sm:$0xff] %vm660_vm3, %v2125_v10 }
 0x9d6   : > { %v2624_v13 = vpop.f32.mrf.mxu0 }
 0x9d7   : > { %v2132_v12 = vsel %vm660_vm3, %v2125_v10, 0.0  ;;  %v2131_v16 = vld [vmem:[%s3758_s5] sm:$0x3] }
 0x9d8   : > { %2133 = vadd.xlane.f32.xlu0 %v2132_v12  ;;  %v2155_v17 = vrot.slane %v2131_v16, %v684_v26  ;;  %v2160_v34 = vrot.slane %v2131_v16, %v689_v28 }
 0xa61   : > { %v2134_v14 = vpop.xlane.xlu0 %2133 }
 0xa62   : > { %v2135_v15 = vmul.f32 0.03125, %v2134_v14 }
 0xa64   : > { %v2136_v18 = vsub.f32 %v2125_v10, %v2135_v15 }
 0xa66   : > { %v2137_v0 = vmul.f32 %v2136_v18, %v2136_v18 }
 0xa68   : > { %v2138_v39 = vsel %vm660_vm3, %v2137_v0, 0.0 }
 0xa69   : > { %2139 = vadd.xlane.f32.xlu0 %v2138_v39 }
 0xaf2   : > { %v2140_v19 = vpop.xlane.xlu0 %2139 }
 0xaf3   : > { %v2141_v20 = vmul.f32 0.032258064, %v2140_v19 }
 0xaf5   : > { %2788 = vrsqrt.f32 %v2141_v20  ;;  %vm2144_vm12 = vcmp.eq.f32.partialorder %v2141_v20, inf  ;;  %v2147_v23 = vand.u32 2147483648, %v2141_v20  ;;  %vm2146_vm13 = vcmp.eq.f32.partialorder %v2141_v20, 0.0 }
 0xb02   : > { %v2789_v21 = vpop.eup %2788 }
 0xb03   : > { %v2143_v22 = vmul.f32 %v2789_v21, %v2141_v20 }
 0xb05   : > { %v2145_v24 = vsel %vm2144_vm12, %v2141_v20, %v2143_v22 }
 0xb06   : > { %v2148_v7 = vsel %vm2146_vm13, %v2147_v23, %v2145_v24 }
 0xb07   : > { %v2149_v31 = vadd.f32 1e-06, %v2148_v7 }
 0xb09   : > { %2790 = vrcp.f32 %v2149_v31 }
 0xb16   : > { %v2791_v32 = vpop.eup %2790 }
 0xb17   : > { %v2151_v33 = vmul.f32 %v2791_v32, %v2136_v18 }
 0xb19   : > { %v2156_v35 = vmul.f32 %v2155_v17, %v2151_v33 }
 0xb1b   : > { %v2161_v36 = vadd.f32 %v2160_v34, %v2156_v35 }
 0xb1d   : > { %2162 = vst.msk [vmem:[%s3387_s3] sm:$0xff] %vm660_vm3, %v2161_v36 }
 0xb1e PF: > { %s3759_s20 = sld [smem:[#allocation20_spill]]  ;;  %s2177_s6 = sshll.u32 %s3387_s3, 4  ;;  %s2178_s6 = int_to_ptr.vmem [resolvable:$true] %s2177_s6 }
 0xb1f   : > { %s3761_s12 = sld [smem:[#allocation39_spill]]  ;;  %s2164_s14 = scalar_lea.sflag [#allocation6], %s3325_s22 }
 0xb20   : > { %s2904_s27 = scalar_lea.vmem %s2178_s6, 128  ;;  %s3052_s28 = smov [#allocation12]  }
 0xb21   : > { %p2905_p8 = scmp.ne.s32.totalorder %s2178_s6, %s2904_s27  ;;  %s2908_s11 = sshll.u32 %s3052_s28, 4  ;;  %s2909_s11 = int_to_ptr.vmem [resolvable:$false] %s2908_s11 }
 0xb22   : > { %s2910_s10 = scalar_lea.vmem %s2909_s11, 256  ;;  %p2911_p0 = scmp.lt.s32.totalorder %s2178_s6, %s2909_s11 }
 0xb23   : > { %p2906_p6 = pnand %p2905_p8, %p3236_p7  ;;  %p2912_p2 = scmp.lt.s32.totalorder %s2910_s10, %s2904_s27 }
 0xb24   : > { %s2458_s24 = sshll.u32 %s3759_s20, 7 }
 0xb25   : > { %s2175_s7 = scalar_lea.hbm %s3761_s12, %s2458_s24  ;;  %p2907_p11 = pneg %p2906_p6 }
 0xb26   : > { %p2913_p5 = por %p2912_p2, %p2911_p0 }
 0xb28   : > { %p2914_p4 = pnand %p2913_p5, %p2907_p11 }
 0xb2a   : > { %2917 = shalt.err (!%p2914_p4)
}
 0xb2b   : > { %s2918_s1 = scalar_lea.hbm %s2175_s7, 128  ;;  %s2922_s15 = scalar_lea.hbm %s3761_s12, 256 }
 0xb2c   : > { %p2919_p12 = scmp.ne.s32.totalorder %s2175_s7, %s2918_s1  ;;  %p2923_p13 = scmp.lt.s32.totalorder %s2175_s7, %s3761_s12 }
 0xb2d   : > { %p2924_p9 = scmp.lt.s32.totalorder %s2922_s15, %s2918_s1 }
 0xb2e   : > { %p2920_p3 = pnand %p2919_p12, %p3236_p7 }
 0xb2f   : > { %p2925_p8 = por %p2924_p9, %p2923_p13 }
 0xb30   : > { %p2921_p1 = pneg %p2920_p3 }
 0xb32   : > { %p2926_p6 = pnand %p2925_p8, %p2921_p1 }
 0xb34   : > { %2929 = shalt.err (!%p2926_p6)
}
 0xb35   : > { %2633 = dma.vmem_to_hbm [thread:$0]  (%p3236_p7), %s2178_s6, 128, %s2175_s7, %s2164_s14  }
 0xb36 PF: > { %s3762_s2 = sld [smem:[#allocation22_spill]] }
 0xb37   : > { %s3763_s8 = sld [smem:[#allocation18_spill]] }
 0xb3c   : > { %p2653_p11 = scmp.ge.s32.totalorder %s3762_s2, 2 }
 0xb3d   : > { %s2189_s26 = sand.u32 1, %s3763_s8  }
 0xb3e   : > { %p2649_p0 = pnand %p2653_p11, %p3243_p10  ;;  %s2190_s23 = scalar_lea.sflag [#allocation6], %s2189_s26 }
 0xb40   : > { %p2650_p2 = pneg %p2649_p0 }
 0xb42   : > { %2991 = dma.done.wait (%p2650_p2), %s2190_s23, 128  }
 0xb43   : > { %2993 = vsyncadd (%p2650_p2), %s2190_s23, 4294967168  ;;  %s33_s27 = sadd.s32 1, %s3762_s2   ;;  %s3765_s9 = sld [smem:[#allocation25_spill]] }
 0xb44   : > { %p30_p5 = scmp.ge.s32.totalorder %s33_s27, 6   ;;  %s3766_s5 = sld [smem:[#allocation19_spill]] }
 0xb45   : > { %s3767_s22 = sld [smem:[#allocation26_spill]]  ;;  %s3771_s17 = smov %s3000_s18 }
 0xb46   : > { %s3768_s24 = sld [smem:[#allocation21_spill]]  ;;  %s3772_s18 = smov %s3004_s19 }
 0xb47   : > { %s3769_s16 = sld [smem:[#allocation23_spill]]  ;;  %s3774_s20 = smov %s3012_s21 }
 0xb48   : > { %s3770_s26 = sld [smem:[#allocation24_spill]]  ;;  %s3776_s23 = smov %s3028_s25 }
 0xb49   : > { %s3773_s19 = smov %s3765_s9  ;;  %32 = sbr.rel (!%p30_p5) target bundleno = 25 (0x19), region = 172 }
 0xb4a   : > { %s3775_s21 = smov %s3766_s5 }
 0xb4d   : > { %s3777_s25 = smov %s3769_s16 }
 0xb4e   :  { %2195 = vsyncpa [#allocation5], 1 }
 0xb4f   :  { %2197 = vsyncpa [#allocation5 + $0x1], 1 }
 0xb50   :  { %2198 = vsyncpa [#allocation8], 1 }
 0xb51   :  { %2200 = vsyncpa [#allocation8 + $0x1], 1 }
 0xb52   :  { %2201 = vsyncpa [#allocation11], 1 }
 0xb53   :  { %2203 = vsyncpa [#allocation11 + $0x1], 1 }
 0xb54   :  { %2204 = vsyncpa [#allocation6], 1 }
 0xb55   :  { %2206 = vsyncpa [#allocation6 + $0x1], 1 }

</bundles_post_ra>
